<compile_context>
chip_gen: v5e
topology: v5e:2x2
jax: 0.10.0
libtpu: 0.0.40
codegen_flags: <defaults>
</compile_context>

<pallas_src>
import functools
import math

import jax
import jax.numpy as jnp
from jax import lax
from jax.experimental import pallas as pl
from jax.experimental.pallas import tpu as pltpu

# ---------------- model sizes (small, consistent with a data-matrix VAE) ----
N_TOTAL = 512   # total batch rows
TILE_N = 128    # rows per grid step (per review: 128-256 is the big lever)
D = 32          # number of observed features (columns of Y)
H = 32          # encoder hidden width
L = 8           # latent dimension
HD = 32         # decoder hidden width
K = 4           # number of BasisVAE basis functions

BIAS_COLS = 32  # lane width of the packed bias slab (max of H, HD, D, L, K)
LOSS_R, LOSS_C = 8, 128  # per-tile partial-loss tile (full (8,128) vreg store)


# ---------------------------------------------------------------------------
# Fused kernel:  Y tile -> encoder -> (mu, sigma, z) -> folded BasisVAE
# decoder -> per-tile partial loss.
# ---------------------------------------------------------------------------
def fused_vae_kernel(batch_scale, beta, gamma,
                     y_ref, eps_ref,
                     enc_w1_ref, enc_wmu_ref, enc_wsig_ref,
                     dec_w1_ref, dec_wf_ref, qlog_ref, bias_ref,
                     mu_ref, sigma_ref, z_ref, loss_ref):
    i = pl.program_id(0)
    y = y_ref[...]                                                  # (TN, D)

    # --- unpack the (8, 32) bias slab (static sub-slices, single DMA) ------
    enc_b1 = bias_ref[0:1, :H]                                      # (1, H)
    enc_bmu = bias_ref[1:2, :L]                                     # (1, L)
    enc_bsig = bias_ref[2:3, :L]                                    # (1, L)
    dec_b1 = bias_ref[3:4, :HD]                                     # (1, HD)
    dec_bf = bias_ref[4:5, :K]                                      # (1, K)
    drop_logit = bias_ref[5:6, :D]                                  # (1, D)
    theta_raw = bias_ref[6:7, :D]                                   # (1, D)

    # --- encoder: Y -> hidden -> (mu, pre_sigma) as two head matmuls -------
    h = jnp.dot(y, enc_w1_ref[...], preferred_element_type=jnp.float32)
    h = jnp.maximum(h + enc_b1, 0.0)                                # (TN, H)
    mu = (jnp.dot(h, enc_wmu_ref[...], preferred_element_type=jnp.float32)
          + enc_bmu)                                                # (TN, L)
    sigma = jax.nn.softplus(
        jnp.dot(h, enc_wsig_ref[...], preferred_element_type=jnp.float32)
        + enc_bsig) + 1e-6                                          # (TN, L)

    # --- reparameterization --------------------------------------------------
    z = mu + sigma * eps_ref[...]                                   # (TN, L)

    mu_ref[...] = mu
    sigma_ref[...] = sigma
    z_ref[...] = z

    # --- decoder: fold K-basis projection into one dense (HD, D) matmul ----
    log_phi = jax.nn.log_softmax(qlog_ref[...], axis=-1)            # (D, K)
    phi = jnp.exp(log_phi)                                          # (D, K)
    w_eff = lax.dot_general(dec_wf_ref[...], phi,
                            dimension_numbers=(((1,), (1,)), ((), ())),
                            preferred_element_type=jnp.float32)     # (HD, D)
    b_eff = lax.dot_general(dec_bf, phi,
                            dimension_numbers=(((1,), (1,)), ((), ())),
                            preferred_element_type=jnp.float32)     # (1, D)

    hd = jnp.dot(z, dec_w1_ref[...], preferred_element_type=jnp.float32)
    hd = jnp.maximum(hd + dec_b1, 0.0)                              # (TN, HD)
    y_pred = (jnp.dot(hd, w_eff, preferred_element_type=jnp.float32)
              + b_eff)                                              # (TN, D)

    # --- zero-inflated Gaussian log-likelihood ------------------------------
    sd = jax.nn.softplus(theta_raw) + 1e-4                          # (1, D)
    inv_sd = pl.reciprocal(sd, approx=True)                         # EUP vrcp
    log_sd = jnp.log(sd)
    log_pi = jax.nn.log_sigmoid(drop_logit)                         # log p(drop)
    log_1mpi = log_pi - drop_logit          # log sigmoid(-x) = log sigmoid(x) - x

    c = (-0.5 * math.log(2.0 * math.pi)) - log_sd                   # (1, D)
    logp_fg = c - 0.5 * jnp.square((y - y_pred) * inv_sd)           # normal comp
    logp_bg = c - 0.5 * jnp.square(y * inv_sd)                      # dropout comp
    loglik = jnp.sum(jnp.logaddexp(log_pi + logp_bg, log_1mpi + logp_fg))

    # --- KL_standard_normal(mu_z, sigma_z) for this tile ---------------------
    kl_z = -0.5 * jnp.sum(1.0 + 2.0 * jnp.log(sigma)
                          - jnp.square(mu) - jnp.square(sigma))

    partial = -batch_scale * loglik + (beta * batch_scale) * kl_z

    # clustering KL: KL(phi_j || Uniform(1/K)); batch-independent -> tile 0 only
    clust_kl = jnp.sum(phi * (log_phi + math.log(float(K))))
    partial = partial + jnp.where(i == 0, gamma * clust_kl, 0.0)

    # broadcast scalar into a full (8, 128) tile (unmasked vst); summed in wrapper
    loss_ref[...] = jnp.full((LOSS_R, LOSS_C), partial, dtype=jnp.float32)


# ---------------------------------------------------------------------------
# Bias-slab packing: 7 tiny (1, X) params -> one (8, 32) slab (one input DMA)
# ---------------------------------------------------------------------------
def _pack_bias_slab(p):
    def row(v):
        v = v.reshape(1, -1)
        return jnp.pad(v, ((0, 0), (0, BIAS_COLS - v.shape[1])))
    rows = [row(p["enc_b1"]), row(p["enc_bmu"]), row(p["enc_bsig"]),
            row(p["dec_b1"]), row(p["dec_bf"]),
            row(p["dec_dropout_logit"]), row(p["dec_theta_raw"]),
            jnp.zeros((1, BIAS_COLS), jnp.float32)]
    return jnp.concatenate(rows, axis=0)                             # (8, 32)


# ---------------------------------------------------------------------------
# VAE.forward equivalent (single batch-gridded pallas_call; hyperparams static)
# ---------------------------------------------------------------------------
@functools.partial(jax.jit, static_argnames=("batch_scale", "beta", "gamma"))
def vae_forward(Y, eps, params, batch_scale=1.0, beta=1.0, gamma=1.0):
    n = Y.shape[0]
    assert n % TILE_N == 0
    grid = n // TILE_N

    kernel = functools.partial(fused_vae_kernel,
                               float(batch_scale), float(beta), float(gamma))
    bias_slab = _pack_bias_slab(params)

    tile_map = lambda i: (i, 0)     # batch-tiled operands
    const_map = lambda i: (0, 0)    # VMEM-resident weights

    mu, sigma, z, loss_parts = pl.pallas_call(
        kernel,
        out_shape=(
            jax.ShapeDtypeStruct((n, L), jnp.float32),               # mu_z
            jax.ShapeDtypeStruct((n, L), jnp.float32),               # sigma_z
            jax.ShapeDtypeStruct((n, L), jnp.float32),               # z
            jax.ShapeDtypeStruct((grid * LOSS_R, LOSS_C), jnp.float32),  # partial loss
        ),
        grid_spec=pltpu.PrefetchScalarGridSpec(
            num_scalar_prefetch=0,
            grid=(grid,),
            in_specs=[
                pl.BlockSpec((TILE_N, D), tile_map),                 # Y
                pl.BlockSpec((TILE_N, L), tile_map),                 # eps
                pl.BlockSpec((D, H), const_map),                     # enc_w1
                pl.BlockSpec((H, L), const_map),                     # enc_wmu
                pl.BlockSpec((H, L), const_map),                     # enc_wsig
                pl.BlockSpec((L, HD), const_map),                    # dec_w1
                pl.BlockSpec((HD, K), const_map),                    # dec_wf
                pl.BlockSpec((D, K), const_map),                     # dec_qlogits
                pl.BlockSpec((8, BIAS_COLS), const_map),             # bias slab
            ],
            out_specs=(
                pl.BlockSpec((TILE_N, L), tile_map),
                pl.BlockSpec((TILE_N, L), tile_map),
                pl.BlockSpec((TILE_N, L), tile_map),
                pl.BlockSpec((LOSS_R, LOSS_C), tile_map),
            ),
        ),
        compiler_params=pltpu.CompilerParams(
            dimension_semantics=("parallel",)),
    )(Y, eps,
      params["enc_w1"], params["enc_wmu"], params["enc_wsig"],
      params["dec_w1"], params["dec_wf"], params["dec_qlogits"], bias_slab)

    total_loss = jnp.sum(loss_parts[::LOSS_R, 0])   # one scalar per grid step
    return mu, sigma, total_loss, z


# ---------------------------------------------------------------------------
# Pure-JAX reference of the same math (sanity check only)
# ---------------------------------------------------------------------------
def vae_forward_ref(Y, eps, p, batch_scale, beta, gamma):
    h = jnp.maximum(Y @ p["enc_w1"] + p["enc_b1"], 0.0)
    mu = h @ p["enc_wmu"] + p["enc_bmu"]
    sigma = jax.nn.softplus(h @ p["enc_wsig"] + p["enc_bsig"]) + 1e-6
    z = mu + sigma * eps
    hd = jnp.maximum(z @ p["dec_w1"] + p["dec_b1"], 0.0)
    f = hd @ p["dec_wf"] + p["dec_bf"]
    log_phi = jax.nn.log_softmax(p["dec_qlogits"], axis=-1)
    phi = jnp.exp(log_phi)
    y_pred = f @ phi.T
    sd = jax.nn.softplus(p["dec_theta_raw"]) + 1e-4
    log_pi = jax.nn.log_sigmoid(p["dec_dropout_logit"])
    log_1mpi = jax.nn.log_sigmoid(-p["dec_dropout_logit"])
    c = -0.5 * math.log(2.0 * math.pi) - jnp.log(sd)
    logp_fg = c - 0.5 * jnp.square((Y - y_pred) / sd)
    logp_bg = c - 0.5 * jnp.square(Y / sd)
    loglik = jnp.sum(jnp.logaddexp(log_pi + logp_bg, log_1mpi + logp_fg))
    clust_kl = jnp.sum(phi * (log_phi + math.log(float(K))))
    kl_z = -0.5 * jnp.sum(1.0 + 2.0 * jnp.log(sigma)
                          - jnp.square(mu) - jnp.square(sigma))
    total = -batch_scale * loglik + gamma * clust_kl + beta * batch_scale * kl_z
    return mu, sigma, total, z


# ---------------------------------------------------------------------------
def init_params(key):
    ks = jax.random.split(key, 9)

    def w(k, shape, scale=0.1):
        return scale * jax.random.normal(k, shape, dtype=jnp.float32)

    return {
        # encoder
        "enc_w1": w(ks[0], (D, H)),
        "enc_b1": jnp.zeros((1, H), jnp.float32),
        "enc_wmu": w(ks[1], (H, L)),
        "enc_bmu": jnp.zeros((1, L), jnp.float32),
        "enc_wsig": w(ks[2], (H, L)),
        "enc_bsig": jnp.zeros((1, L), jnp.float32),
        # decoder
        "dec_w1": w(ks[3], (L, HD)),
        "dec_b1": jnp.zeros((1, HD), jnp.float32),
        "dec_wf": w(ks[4], (HD, K)),
        "dec_bf": jnp.zeros((1, K), jnp.float32),
        "dec_qlogits": w(ks[5], (D, K), scale=0.5),        # feature->basis logits
        "dec_dropout_logit": w(ks[6], (1, D), scale=0.5),  # dropout_prob_logit
        "dec_theta_raw": w(ks[7], (1, D), scale=0.5),      # pre-softplus noise scale
    }


if __name__ == "__main__":
    key = jax.random.PRNGKey(0)
    k_param, k_data, k_eps = jax.random.split(key, 3)

    params = init_params(k_param)
    Y = jax.random.normal(k_data, (N_TOTAL, D), dtype=jnp.float32)
    eps = jax.random.normal(k_eps, (N_TOTAL, L), dtype=jnp.float32)  # randn_like(mu_z)

    mu_z, sigma_z, total_loss, z = vae_forward(
        Y, eps, params, batch_scale=2.0, beta=1.0, gamma=1.0)
    jax.block_until_ready((mu_z, sigma_z, total_loss, z))

    # shape / sanity checks
    assert mu_z.shape == (N_TOTAL, L) and sigma_z.shape == (N_TOTAL, L)
    assert z.shape == (N_TOTAL, L)
    assert total_loss.shape == ()
    assert jnp.isfinite(total_loss)
    assert bool(jnp.all(sigma_z > 0))

    # numerical check against a pure-JAX reference of the same math
    r_mu, r_sigma, r_loss, r_z = vae_forward_ref(Y, eps, params, 2.0, 1.0, 1.0)
    assert jnp.allclose(mu_z, r_mu, rtol=2e-3, atol=2e-3)
    assert jnp.allclose(sigma_z, r_sigma, rtol=2e-3, atol=2e-3)
    assert jnp.allclose(z, r_z, rtol=2e-3, atol=2e-3)
    # loose loss tolerance: approx reciprocal (~1e-3 rel) + tile-sum reduction order
    assert jnp.allclose(total_loss, r_loss, rtol=1e-2, atol=1.0)

    print("KERNEL_OK")
</pallas_src>

<mosaic_0001>
module attributes {stable_mosaic.version = 11 : i64} {
  func.func @fused_vae_kernel(%arg0: i32, %arg1: memref<128x32xf32, #tpu.memory_space<vmem>>, %arg2: memref<128x8xf32, #tpu.memory_space<vmem>>, %arg3: memref<32x32xf32, #tpu.memory_space<vmem>>, %arg4: memref<32x8xf32, #tpu.memory_space<vmem>>, %arg5: memref<32x8xf32, #tpu.memory_space<vmem>>, %arg6: memref<8x32xf32, #tpu.memory_space<vmem>>, %arg7: memref<32x4xf32, #tpu.memory_space<vmem>>, %arg8: memref<32x4xf32, #tpu.memory_space<vmem>>, %arg9: memref<8x32xf32, #tpu.memory_space<vmem>>, %arg10: memref<128x8xf32, #tpu.memory_space<vmem>>, %arg11: memref<128x8xf32, #tpu.memory_space<vmem>>, %arg12: memref<128x8xf32, #tpu.memory_space<vmem>>, %arg13: memref<8x128xf32, #tpu.memory_space<vmem>>) attributes {dimension_semantics = [#tpu.dimension_semantics<parallel>], iteration_bounds = array<i64: 4>, scalar_prefetch = 0 : i64, scratch_operands = 0 : i64, tpu.core_type = #tpu.core_type<tc>, window_params = [{transform_indices = @transform_0, window_bounds = array<i64: 128, 32>}, {transform_indices = @transform_1, window_bounds = array<i64: 128, 8>}, {pipeline_mode = #tpu.pipeline_mode<synchronous>, transform_indices = @transform_2, window_bounds = array<i64: 32, 32>}, {pipeline_mode = #tpu.pipeline_mode<synchronous>, transform_indices = @transform_3, window_bounds = array<i64: 32, 8>}, {pipeline_mode = #tpu.pipeline_mode<synchronous>, transform_indices = @transform_4, window_bounds = array<i64: 32, 8>}, {pipeline_mode = #tpu.pipeline_mode<synchronous>, transform_indices = @transform_5, window_bounds = array<i64: 8, 32>}, {pipeline_mode = #tpu.pipeline_mode<synchronous>, transform_indices = @transform_6, window_bounds = array<i64: 32, 4>}, {pipeline_mode = #tpu.pipeline_mode<synchronous>, transform_indices = @transform_7, window_bounds = array<i64: 32, 4>}, {pipeline_mode = #tpu.pipeline_mode<synchronous>, transform_indices = @transform_8, window_bounds = array<i64: 8, 32>}, {transform_indices = @transform_9, window_bounds = array<i64: 128, 8>}, {transform_indices = @transform_10, window_bounds = array<i64: 128, 8>}, {transform_indices = @transform_11, window_bounds = array<i64: 128, 8>}, {transform_indices = @transform_12, window_bounds = array<i64: 8, 128>}]} {
    %c0 = arith.constant 0 : index
    %c0_0 = arith.constant 0 : index
    %0 = vector.load %arg1[%c0, %c0_0] : memref<128x32xf32, #tpu.memory_space<vmem>>, vector<128x32xf32>
    %c0_1 = arith.constant 0 : index
    %c0_2 = arith.constant 0 : index
    %1 = vector.load %arg9[%c0_1, %c0_2] : memref<8x32xf32, #tpu.memory_space<vmem>>, vector<1x32xf32>
    %c1 = arith.constant 1 : index
    %c0_3 = arith.constant 0 : index
    %2 = vector.load %arg9[%c1, %c0_3] : memref<8x32xf32, #tpu.memory_space<vmem>>, vector<1x8xf32>
    %c2 = arith.constant 2 : index
    %c0_4 = arith.constant 0 : index
    %3 = vector.load %arg9[%c2, %c0_4] : memref<8x32xf32, #tpu.memory_space<vmem>>, vector<1x8xf32>
    %c3 = arith.constant 3 : index
    %c0_5 = arith.constant 0 : index
    %4 = vector.load %arg9[%c3, %c0_5] : memref<8x32xf32, #tpu.memory_space<vmem>>, vector<1x32xf32>
    %c4 = arith.constant 4 : index
    %c0_6 = arith.constant 0 : index
    %5 = vector.load %arg9[%c4, %c0_6] : memref<8x32xf32, #tpu.memory_space<vmem>>, vector<1x4xf32>
    %c5 = arith.constant 5 : index
    %c0_7 = arith.constant 0 : index
    %6 = vector.load %arg9[%c5, %c0_7] : memref<8x32xf32, #tpu.memory_space<vmem>>, vector<1x32xf32>
    %c6 = arith.constant 6 : index
    %c0_8 = arith.constant 0 : index
    %7 = vector.load %arg9[%c6, %c0_8] : memref<8x32xf32, #tpu.memory_space<vmem>>, vector<1x32xf32>
    %c0_9 = arith.constant 0 : index
    %c0_10 = arith.constant 0 : index
    %8 = vector.load %arg3[%c0_9, %c0_10] : memref<32x32xf32, #tpu.memory_space<vmem>>, vector<32x32xf32>
    %cst = arith.constant dense<0.000000e+00> : vector<128x32xf32>
    %9 = tpu.matmul %0, %8, %cst {dimension_numbers = #tpu.dot_dimension_numbers<[1], [0], [0], [1], [0, 0, 1, 1], [], []>} : vector<128x32xf32>, vector<32x32xf32>, vector<128x32xf32> -> vector<128x32xf32>
    %10 = vector.broadcast %1 : vector<1x32xf32> to vector<128x32xf32>
    %11 = arith.addf %9, %10 : vector<128x32xf32>
    %cst_11 = arith.constant 0.000000e+00 : f32
    %12 = vector.broadcast %cst_11 : f32 to vector<128x32xf32>
    %13 = arith.maximumf %11, %12 : vector<128x32xf32>
    %c0_12 = arith.constant 0 : index
    %c0_13 = arith.constant 0 : index
    %14 = vector.load %arg4[%c0_12, %c0_13] : memref<32x8xf32, #tpu.memory_space<vmem>>, vector<32x8xf32>
    %cst_14 = arith.constant dense<0.000000e+00> : vector<128x8xf32>
    %15 = tpu.matmul %13, %14, %cst_14 {dimension_numbers = #tpu.dot_dimension_numbers<[1], [0], [0], [1], [0, 0, 1, 1], [], []>} : vector<128x32xf32>, vector<32x8xf32>, vector<128x8xf32> -> vector<128x8xf32>
    %16 = vector.broadcast %2 : vector<1x8xf32> to vector<128x8xf32>
    %17 = arith.addf %15, %16 : vector<128x8xf32>
    %c0_15 = arith.constant 0 : index
    %c0_16 = arith.constant 0 : index
    %18 = vector.load %arg5[%c0_15, %c0_16] : memref<32x8xf32, #tpu.memory_space<vmem>>, vector<32x8xf32>
    %cst_17 = arith.constant dense<0.000000e+00> : vector<128x8xf32>
    %19 = tpu.matmul %13, %18, %cst_17 {dimension_numbers = #tpu.dot_dimension_numbers<[1], [0], [0], [1], [0, 0, 1, 1], [], []>} : vector<128x32xf32>, vector<32x8xf32>, vector<128x8xf32> -> vector<128x8xf32>
    %20 = vector.broadcast %3 : vector<1x8xf32> to vector<128x8xf32>
    %21 = arith.addf %19, %20 : vector<128x8xf32>
    %cst_18 = arith.constant 0.000000e+00 : f32
    %22 = vector.broadcast %cst_18 : f32 to vector<128x8xf32>
    %23 = arith.maximumf %21, %22 : vector<128x8xf32>
    %24 = vector.broadcast %cst_18 : f32 to vector<128x8xf32>
    %25 = arith.subf %21, %24 : vector<128x8xf32>
    %26 = arith.cmpf one, %25, %25 : vector<128x8xf32>
    %27 = vector.broadcast %cst_18 : f32 to vector<128x8xf32>
    %28 = arith.addf %21, %27 : vector<128x8xf32>
    %29 = math.absf %25 : vector<128x8xf32>
    %cst_19 = arith.constant 0.000000e+00 : f32
    %30 = vector.broadcast %cst_19 : f32 to vector<128x8xf32>
    %31 = arith.subf %30, %29 : vector<128x8xf32>
    %32 = math.exp %31 : vector<128x8xf32>
    %33 = math.log1p %32 : vector<128x8xf32>
    %34 = arith.addf %23, %33 : vector<128x8xf32>
    %35 = arith.select %26, %28, %34 : vector<128x8xi1>, vector<128x8xf32>
    %cst_20 = arith.constant 9.99999997E-7 : f32
    %36 = vector.broadcast %cst_20 : f32 to vector<128x8xf32>
    %37 = arith.addf %35, %36 : vector<128x8xf32>
    %c0_21 = arith.constant 0 : index
    %c0_22 = arith.constant 0 : index
    %38 = vector.load %arg2[%c0_21, %c0_22] : memref<128x8xf32, #tpu.memory_space<vmem>>, vector<128x8xf32>
    %39 = arith.mulf %37, %38 : vector<128x8xf32>
    %40 = arith.addf %17, %39 : vector<128x8xf32>
    %c0_23 = arith.constant 0 : index
    %c0_24 = arith.constant 0 : index
    %41 = vector.load %arg10[%c0_23, %c0_24] : memref<128x8xf32, #tpu.memory_space<vmem>>, vector<128x8xf32>
    tpu.vector_store %arg10[%c0_23, %c0_24], %17 {strides = array<i32>} : memref<128x8xf32, #tpu.memory_space<vmem>>, vector<128x8xf32>,
    %c0_25 = arith.constant 0 : index
    %c0_26 = arith.constant 0 : index
    %42 = vector.load %arg11[%c0_25, %c0_26] : memref<128x8xf32, #tpu.memory_space<vmem>>, vector<128x8xf32>
    tpu.vector_store %arg11[%c0_25, %c0_26], %37 {strides = array<i32>} : memref<128x8xf32, #tpu.memory_space<vmem>>, vector<128x8xf32>,
    %c0_27 = arith.constant 0 : index
    %c0_28 = arith.constant 0 : index
    %43 = vector.load %arg12[%c0_27, %c0_28] : memref<128x8xf32, #tpu.memory_space<vmem>>, vector<128x8xf32>
    tpu.vector_store %arg12[%c0_27, %c0_28], %40 {strides = array<i32>} : memref<128x8xf32, #tpu.memory_space<vmem>>, vector<128x8xf32>,
    %c0_29 = arith.constant 0 : index
    %c0_30 = arith.constant 0 : index
    %44 = vector.load %arg8[%c0_29, %c0_30] : memref<32x4xf32, #tpu.memory_space<vmem>>, vector<32x4xf32>
    %cst_31 = arith.constant dense<0xFF800000> : vector<32xf32>
    %45 = vector.multi_reduction <maximumf>, %44, %cst_31 [1] : vector<32x4xf32> to vector<32xf32>
    %cst_32 = arith.constant 0xFF800000 : f32
    %46 = vector.broadcast %cst_32 : f32 to vector<32xf32>
    %47 = arith.maximumf %46, %45 : vector<32xf32>
    %48 = vector.shape_cast %47 : vector<32xf32> to vector<32x1xf32>
    %49 = vector.broadcast %48 : vector<32x1xf32> to vector<32x4xf32>
    %50 = arith.subf %44, %49 : vector<32x4xf32>
    %51 = math.exp %50 : vector<32x4xf32>
    %cst_33 = arith.constant dense<0.000000e+00> : vector<32xf32>
    %52 = vector.multi_reduction <add>, %51, %cst_33 [1] : vector<32x4xf32> to vector<32xf32>
    %53 = vector.shape_cast %52 : vector<32xf32> to vector<32x1xf32>
    %54 = math.log %53 : vector<32x1xf32>
    %55 = vector.broadcast %54 : vector<32x1xf32> to vector<32x4xf32>
    %56 = arith.subf %50, %55 : vector<32x4xf32>
    %57 = math.exp %56 : vector<32x4xf32>
    %c0_34 = arith.constant 0 : index
    %c0_35 = arith.constant 0 : index
    %58 = vector.load %arg7[%c0_34, %c0_35] : memref<32x4xf32, #tpu.memory_space<vmem>>, vector<32x4xf32>
    %cst_36 = arith.constant dense<0.000000e+00> : vector<32x32xf32>
    %59 = tpu.matmul %58, %57, %cst_36 {dimension_numbers = #tpu.dot_dimension_numbers<[1], [1], [0], [0], [0, 0, 1, 0], [], []>} : vector<32x4xf32>, vector<32x4xf32>, vector<32x32xf32> -> vector<32x32xf32>
    %cst_37 = arith.constant dense<0.000000e+00> : vector<1x32xf32>
    %60 = tpu.matmul %5, %57, %cst_37 {dimension_numbers = #tpu.dot_dimension_numbers<[1], [1], [0], [0], [0, 0, 1, 0], [], []>} : vector<1x4xf32>, vector<32x4xf32>, vector<1x32xf32> -> vector<1x32xf32>
    %c0_38 = arith.constant 0 : index
    %c0_39 = arith.constant 0 : index
    %61 = vector.load %arg6[%c0_38, %c0_39] : memref<8x32xf32, #tpu.memory_space<vmem>>, vector<8x32xf32>
    %cst_40 = arith.constant dense<0.000000e+00> : vector<128x32xf32>
    %62 = tpu.matmul %40, %61, %cst_40 {dimension_numbers = #tpu.dot_dimension_numbers<[1], [0], [0], [1], [0, 0, 1, 1], [], []>} : vector<128x8xf32>, vector<8x32xf32>, vector<128x32xf32> -> vector<128x32xf32>
    %63 = vector.broadcast %4 : vector<1x32xf32> to vector<128x32xf32>
    %64 = arith.addf %62, %63 : vector<128x32xf32>
    %cst_41 = arith.constant 0.000000e+00 : f32
    %65 = vector.broadcast %cst_41 : f32 to vector<128x32xf32>
    %66 = arith.maximumf %64, %65 : vector<128x32xf32>
    %cst_42 = arith.constant dense<0.000000e+00> : vector<128x32xf32>
    %67 = tpu.matmul %66, %59, %cst_42 {dimension_numbers = #tpu.dot_dimension_numbers<[1], [0], [0], [1], [0, 0, 1, 1], [], []>} : vector<128x32xf32>, vector<32x32xf32>, vector<128x32xf32> -> vector<128x32xf32>
    %68 = vector.broadcast %60 : vector<1x32xf32> to vector<128x32xf32>
    %69 = arith.addf %67, %68 : vector<128x32xf32>
    %cst_43 = arith.constant 0.000000e+00 : f32
    %70 = vector.broadcast %cst_43 : f32 to vector<1x32xf32>
    %71 = arith.maximumf %7, %70 : vector<1x32xf32>
    %72 = vector.broadcast %cst_43 : f32 to vector<1x32xf32>
    %73 = arith.subf %7, %72 : vector<1x32xf32>
    %74 = arith.cmpf one, %73, %73 : vector<1x32xf32>
    %75 = vector.broadcast %cst_43 : f32 to vector<1x32xf32>
    %76 = arith.addf %7, %75 : vector<1x32xf32>
    %77 = math.absf %73 : vector<1x32xf32>
    %cst_44 = arith.constant 0.000000e+00 : f32
    %78 = vector.broadcast %cst_44 : f32 to vector<1x32xf32>
    %79 = arith.subf %78, %77 : vector<1x32xf32>
    %80 = math.exp %79 : vector<1x32xf32>
    %81 = math.log1p %80 : vector<1x32xf32>
    %82 = arith.addf %71, %81 : vector<1x32xf32>
    %83 = arith.select %74, %76, %82 : vector<1x32xi1>, vector<1x32xf32>
    %cst_45 = arith.constant 9.99999974E-5 : f32
    %84 = vector.broadcast %cst_45 : f32 to vector<1x32xf32>
    %85 = arith.addf %83, %84 : vector<1x32xf32>
    %86 = tpu.reciprocal %85 {approx = true} : vector<1x32xf32> -> vector<1x32xf32>
    %87 = math.log %85 : vector<1x32xf32>
    %cst_46 = arith.constant 0.000000e+00 : f32
    %88 = vector.broadcast %cst_46 : f32 to vector<1x32xf32>
    %89 = arith.subf %88, %6 : vector<1x32xf32>
    %cst_47 = arith.constant 0.000000e+00 : f32
    %90 = vector.broadcast %cst_47 : f32 to vector<1x32xf32>
    %91 = arith.maximumf %89, %90 : vector<1x32xf32>
    %92 = vector.broadcast %cst_47 : f32 to vector<1x32xf32>
    %93 = arith.subf %89, %92 : vector<1x32xf32>
    %94 = arith.cmpf one, %93, %93 : vector<1x32xf32>
    %95 = vector.broadcast %cst_47 : f32 to vector<1x32xf32>
    %96 = arith.addf %89, %95 : vector<1x32xf32>
    %97 = math.absf %93 : vector<1x32xf32>
    %cst_48 = arith.constant 0.000000e+00 : f32
    %98 = vector.broadcast %cst_48 : f32 to vector<1x32xf32>
    %99 = arith.subf %98, %97 : vector<1x32xf32>
    %100 = math.exp %99 : vector<1x32xf32>
    %101 = math.log1p %100 : vector<1x32xf32>
    %102 = arith.addf %91, %101 : vector<1x32xf32>
    %103 = arith.select %94, %96, %102 : vector<1x32xi1>, vector<1x32xf32>
    %cst_49 = arith.constant 0.000000e+00 : f32
    %104 = vector.broadcast %cst_49 : f32 to vector<1x32xf32>
    %105 = arith.subf %104, %103 : vector<1x32xf32>
    %106 = arith.subf %105, %6 : vector<1x32xf32>
    %cst_50 = arith.constant -0.918938517 : f32
    %107 = vector.broadcast %cst_50 : f32 to vector<1x32xf32>
    %108 = arith.subf %107, %87 : vector<1x32xf32>
    %109 = arith.subf %0, %69 : vector<128x32xf32>
    %110 = vector.broadcast %86 : vector<1x32xf32> to vector<128x32xf32>
    %111 = arith.mulf %109, %110 : vector<128x32xf32>
    %112 = arith.mulf %111, %111 : vector<128x32xf32>
    %cst_51 = arith.constant 5.000000e-01 : f32
    %113 = vector.broadcast %cst_51 : f32 to vector<128x32xf32>
    %114 = arith.mulf %113, %112 : vector<128x32xf32>
    %115 = vector.broadcast %108 : vector<1x32xf32> to vector<128x32xf32>
    %116 = arith.subf %115, %114 : vector<128x32xf32>
    %117 = vector.broadcast %86 : vector<1x32xf32> to vector<128x32xf32>
    %118 = arith.mulf %0, %117 : vector<128x32xf32>
    %119 = arith.mulf %118, %118 : vector<128x32xf32>
    %cst_52 = arith.constant 5.000000e-01 : f32
    %120 = vector.broadcast %cst_52 : f32 to vector<128x32xf32>
    %121 = arith.mulf %120, %119 : vector<128x32xf32>
    %122 = vector.broadcast %108 : vector<1x32xf32> to vector<128x32xf32>
    %123 = arith.subf %122, %121 : vector<128x32xf32>
    %124 = vector.broadcast %105 : vector<1x32xf32> to vector<128x32xf32>
    %125 = arith.addf %124, %123 : vector<128x32xf32>
    %126 = vector.broadcast %106 : vector<1x32xf32> to vector<128x32xf32>
    %127 = arith.addf %126, %116 : vector<128x32xf32>
    %128 = arith.maximumf %125, %127 : vector<128x32xf32>
    %129 = arith.subf %125, %127 : vector<128x32xf32>
    %130 = arith.cmpf one, %129, %129 : vector<128x32xf32>
    %131 = arith.addf %125, %127 : vector<128x32xf32>
    %132 = math.absf %129 : vector<128x32xf32>
    %cst_53 = arith.constant 0.000000e+00 : f32
    %133 = vector.broadcast %cst_53 : f32 to vector<128x32xf32>
    %134 = arith.subf %133, %132 : vector<128x32xf32>
    %135 = math.exp %134 : vector<128x32xf32>
    %136 = math.log1p %135 : vector<128x32xf32>
    %137 = arith.addf %128, %136 : vector<128x32xf32>
    %138 = arith.select %130, %131, %137 : vector<128x32xi1>, vector<128x32xf32>
    %139 = vector.shape_cast %138 : vector<128x32xf32> to vector<1x128x32xf32>
    %cst_54 = arith.constant dense<0.000000e+00> : vector<1xf32>
    %140 = vector.multi_reduction <add>, %139, %cst_54 [1, 2] : vector<1x128x32xf32> to vector<1xf32>
    %141 = vector.shape_cast %140 : vector<1xf32> to vector<1x1x1xf32>
    %142 = vector.extract %141[0, 0, 0] : f32 from vector<1x1x1xf32>
    %143 = math.log %37 : vector<128x8xf32>
    %cst_55 = arith.constant 2.000000e+00 : f32
    %144 = vector.broadcast %cst_55 : f32 to vector<128x8xf32>
    %145 = arith.mulf %144, %143 : vector<128x8xf32>
    %cst_56 = arith.constant 1.000000e+00 : f32
    %146 = vector.broadcast %cst_56 : f32 to vector<128x8xf32>
    %147 = arith.addf %146, %145 : vector<128x8xf32>
    %148 = arith.mulf %17, %17 : vector<128x8xf32>
    %149 = arith.subf %147, %148 : vector<128x8xf32>
    %150 = arith.mulf %37, %37 : vector<128x8xf32>
    %151 = arith.subf %149, %150 : vector<128x8xf32>
    %152 = vector.shape_cast %151 : vector<128x8xf32> to vector<1x128x8xf32>
    %cst_57 = arith.constant dense<0.000000e+00> : vector<1xf32>
    %153 = vector.multi_reduction <add>, %152, %cst_57 [1, 2] : vector<1x128x8xf32> to vector<1xf32>
    %154 = vector.shape_cast %153 : vector<1xf32> to vector<1x1x1xf32>
    %155 = vector.extract %154[0, 0, 0] : f32 from vector<1x1x1xf32>
    %cst_58 = arith.constant -5.000000e-01 : f32
    %156 = arith.mulf %cst_58, %155 : f32
    %cst_59 = arith.constant -2.000000e+00 : f32
    %157 = arith.mulf %cst_59, %142 : f32
    %cst_60 = arith.constant 2.000000e+00 : f32
    %158 = arith.mulf %cst_60, %156 : f32
    %159 = arith.addf %157, %158 : f32
    %cst_61 = arith.constant 1.38629436 : f32
    %160 = vector.broadcast %cst_61 : f32 to vector<32x4xf32>
    %161 = arith.addf %56, %160 : vector<32x4xf32>
    %162 = arith.mulf %57, %161 : vector<32x4xf32>
    %163 = vector.shape_cast %162 : vector<32x4xf32> to vector<1x32x4xf32>
    %cst_62 = arith.constant dense<0.000000e+00> : vector<1xf32>
    %164 = vector.multi_reduction <add>, %163, %cst_62 [1, 2] : vector<1x32x4xf32> to vector<1xf32>
    %165 = vector.shape_cast %164 : vector<1xf32> to vector<1x1x1xf32>
    %166 = vector.extract %165[0, 0, 0] : f32 from vector<1x1x1xf32>
    %c0_i32 = arith.constant 0 : i32
    %167 = arith.cmpi eq, %arg0, %c0_i32 : i32
    %cst_63 = arith.constant 1.000000e+00 : f32
    %168 = arith.mulf %cst_63, %166 : f32
    %cst_64 = arith.constant 0.000000e+00 : f32
    %169 = arith.select %167, %168, %cst_64 : f32
    %170 = arith.addf %159, %169 : f32
    %171 = vector.broadcast %170 : f32 to vector<8x128xf32>
    %c0_65 = arith.constant 0 : index
    %c0_66 = arith.constant 0 : index
    %172 = vector.load %arg13[%c0_65, %c0_66] : memref<8x128xf32, #tpu.memory_space<vmem>>, vector<8x128xf32>
    tpu.vector_store %arg13[%c0_65, %c0_66], %171 {strides = array<i32>} : memref<8x128xf32, #tpu.memory_space<vmem>>, vector<8x128xf32>,
    return
  }
  func.func @transform_0(%arg0: i32) -> (i32, i32) {
    %c0_i32 = arith.constant 0 : i32
    %c0_i32_0 = arith.constant 0 : i32
    return %arg0, %c0_i32 : i32, i32
  }
  func.func @transform_1(%arg0: i32) -> (i32, i32) {
    %c0_i32 = arith.constant 0 : i32
    %c0_i32_0 = arith.constant 0 : i32
    return %arg0, %c0_i32 : i32, i32
  }
  func.func @transform_2(%arg0: i32) -> (i32, i32) {
    %c0_i32 = arith.constant 0 : i32
    %c0_i32_0 = arith.constant 0 : i32
    %c0_i32_1 = arith.constant 0 : i32
    return %c0_i32, %c0_i32_0 : i32, i32
  }
  func.func @transform_3(%arg0: i32) -> (i32, i32) {
    %c0_i32 = arith.constant 0 : i32
    %c0_i32_0 = arith.constant 0 : i32
    %c0_i32_1 = arith.constant 0 : i32
    return %c0_i32, %c0_i32_0 : i32, i32
  }
  func.func @transform_4(%arg0: i32) -> (i32, i32) {
    %c0_i32 = arith.constant 0 : i32
    %c0_i32_0 = arith.constant 0 : i32
    %c0_i32_1 = arith.constant 0 : i32
    return %c0_i32, %c0_i32_0 : i32, i32
  }
  func.func @transform_5(%arg0: i32) -> (i32, i32) {
    %c0_i32 = arith.constant 0 : i32
    %c0_i32_0 = arith.constant 0 : i32
    %c0_i32_1 = arith.constant 0 : i32
    return %c0_i32, %c0_i32_0 : i32, i32
  }
  func.func @transform_6(%arg0: i32) -> (i32, i32) {
    %c0_i32 = arith.constant 0 : i32
    %c0_i32_0 = arith.constant 0 : i32
    %c0_i32_1 = arith.constant 0 : i32
    return %c0_i32, %c0_i32_0 : i32, i32
  }
  func.func @transform_7(%arg0: i32) -> (i32, i32) {
    %c0_i32 = arith.constant 0 : i32
    %c0_i32_0 = arith.constant 0 : i32
    %c0_i32_1 = arith.constant 0 : i32
    return %c0_i32, %c0_i32_0 : i32, i32
  }
  func.func @transform_8(%arg0: i32) -> (i32, i32) {
    %c0_i32 = arith.constant 0 : i32
    %c0_i32_0 = arith.constant 0 : i32
    %c0_i32_1 = arith.constant 0 : i32
    return %c0_i32, %c0_i32_0 : i32, i32
  }
  func.func @transform_9(%arg0: i32) -> (i32, i32) {
    %c0_i32 = arith.constant 0 : i32
    %c0_i32_0 = arith.constant 0 : i32
    return %arg0, %c0_i32 : i32, i32
  }
  func.func @transform_10(%arg0: i32) -> (i32, i32) {
    %c0_i32 = arith.constant 0 : i32
    %c0_i32_0 = arith.constant 0 : i32
    return %arg0, %c0_i32 : i32, i32
  }
  func.func @transform_11(%arg0: i32) -> (i32, i32) {
    %c0_i32 = arith.constant 0 : i32
    %c0_i32_0 = arith.constant 0 : i32
    return %arg0, %c0_i32 : i32, i32
  }
  func.func @transform_12(%arg0: i32) -> (i32, i32) {
    %c0_i32 = arith.constant 0 : i32
    %c0_i32_0 = arith.constant 0 : i32
    return %arg0, %c0_i32 : i32, i32
  }
}

</mosaic_0001>

<bundles_post_ra>
// kernel: vae_forward.1
= control target key start
LH: loop header
LB: loop body
LE: loop exit
PB: predicated region body
PF: predicated region fallthrough
CT: control target
= control target key end

     0   :  { %s2969_s21 = smov 0   ;;  %s4399_s0 = inlined_call_operand.vmem [shape: f32[512,32], index: 0, kind: input, shape index: {}]   ;;  %s4400_s1 = inlined_call_operand.vmem [shape: f32[512,8], index: 1, kind: input, shape index: {}]   ;;  %s4401_s2 = inlined_call_operand.vmem [shape: f32[32,32], index: 2, kind: input, shape index: {}]   ;;  %s4402_s3 = inlined_call_operand.vmem [shape: f32[32,8], index: 3, kind: input, shape index: {}]   ;;  %s4403_s4 = inlined_call_operand.vmem [shape: f32[32,8], index: 4, kind: input, shape index: {}]   ;;  %s4404_s5 = inlined_call_operand.vmem [shape: f32[8,32], index: 5, kind: input, shape index: {}]   ;;  %s4405_s6 = inlined_call_operand.vmem [shape: f32[32,4], index: 6, kind: input, shape index: {}]   ;;  %s4406_s7 = inlined_call_operand.vmem [shape: f32[32,4], index: 7, kind: input, shape index: {}]   ;;  %s4407_s8 = inlined_call_operand.vmem [shape: f32[8,32], index: 8, kind: input, shape index: {}]   ;;  %s4408_s9 = inlined_call_operand.vmem [shape: f32[512,8], index: 9, kind: output, shape index: {0}]   ;;  %s4409_s10 = inlined_call_operand.vmem [shape: f32[512,8], index: 10, kind: output, shape index: {1}]   ;;  %s4410_s11 = inlined_call_operand.vmem [shape: f32[512,8], index: 11, kind: output, shape index: {2}]   ;;  %s4411_s12 = inlined_call_operand.vmem [shape: f32[32,128], index: 12, kind: output, shape index: {3}]  }
   0x1 LB: > { %s2975_s22 = sadd.s32 4294967295, %s2902_s21   ;;  %p2549_p0 = scmp.ge.s32.totalorder %s2902_s21, 1  ;;  %s2902_s21 = sphi %s2969_s21, %s23_s21  }
   0x2   : > { %p381_p1 = scmp.lt.s32.totalorder %s2902_s21, 5 }
   0x4   : > { %p382_p2 = pnand %p2549_p0, %p381_p1 }
   0x5   : > { %s2550_s29 = sshll.u32 (!%p382_p2), %s2975_s22, 4  ;;  %p472_p4 = scmp.lt.s32.totalorder (!%p382_p2), %s2975_s22, 3 }
   0x6   : > { %385 = sbr.rel (%p382_p2) target bundleno = 955 (0x3bb), region = 56  ;;  %p443_p3 = scmp.lt.s32.totalorder (!%p382_p2), %s2550_s29, 63 }
   0x7   : > { %p2373_p5 = scmp.eq.s32.totalorder (!%p382_p2), %s2975_s22, 0 }
   0xb   : > { %v502_v0 = vld [vmem:[%s4401_s2 + $0x18] sm:$0xff]  ;;  %vm1227_vm0 = vcmask 31744   ;;  %v2990_v2 = vld [vmem:[%s4406_s7 + $0x8] sm:$0xff]  ;;  %v501_v5 = vld [vmem:[%s4401_s2 + $0x10] sm:$0xff]  ;;  %s4447_s29 = smov (!%p443_p3, %s2550_s29), 63  ;;  %vm504_vm1 = vcmask 261120  }
   0xc   : > { %v2985_v1 = vld [vmem:[%s4406_s7 + $0x18] sm:$0xff]  ;;  %565 = vmatpush.msra.mxu0 %v502_v0  ;;  %v1231_v4 = vsel %vm1227_vm0, %v2990_v2, -inf  ;;  %2656 = vmatpush.msra.mxu1 %v502_v0  ;;  %v500_v6 = vld [vmem:[%s4401_s2 + $0x8] sm:$0xff]  ;;  %v499_v7 = vld [vmem:[%s4401_s2] sm:$0xff]  ;;  %s3016_s24 = sshll.u32 %s4447_s29, 3  ;;  %vm1174_vm2 = vcmask 64512  }
   0xd   : > { %v1237_v3 = vsel %vm1227_vm0, %v2985_v1, -inf  ;;  %1232 = vmax.xlane.f32.xlu1 %v1231_v4  ;;  %v3009_v8 = vld [vmem:[%s4406_s7 + $0x10] sm:$0xff]  ;;  %v3014_v9 = vld [vmem:[%s4406_s7] sm:$0xff]  ;;  %2657 = vmatpush.msra.mxu2 %v502_v0  ;;  %s3022_s27 = scalar_lea.vmem %s4399_s0, %s3016_s24  ;;  %v755_v28 = vld [vmem:[%s4403_s4 + $0x18] sm:$0xff]  ;;  %s3170_s18 = scalar_lea.vmem %s4408_s9, %s3016_s24 }
   0xe   : > { %1238 = vmax.xlane.f32.xlu0 %v1237_v3  ;;  %566 = vmatpush.msra.mxu0 %v501_v5  ;;  %v476_v10 = vld [vmem:[%s3022_s27] sm:$0xff]  ;;  %v1234_v11 = vsel %vm1227_vm0, %v3009_v8, -inf  ;;  %v1228_v12 = vsel %vm1227_vm0, %v3014_v9, -inf  ;;  %v477_v13 = vld [vmem:[%s3022_s27 + $0x8] sm:$0xff]  ;;  %v482_v14 = vld [vmem:[%s3022_s27 + $0x30] sm:$0xff]  ;;  %s3251_s15 = scalar_lea.vmem %s4400_s1, %s3016_s24  ;;  %s3265_s23 = scalar_lea.vmem %s4409_s10, %s3016_s24 }
   0xf   : > { %2658 = vmatpush.msra.mxu1 %v501_v5  ;;  %2659 = vmatpush.msra.mxu2 %v501_v5  ;;  %v478_v15 = vld [vmem:[%s3022_s27 + $0x10] sm:$0xff]  ;;  %v483_v16 = vld [vmem:[%s3022_s27 + $0x38] sm:$0xff]  ;;  %v488_v18 = vld [vmem:[%s3022_s27 + $0x60] sm:$0xff]  ;;  %s3294_s28 = scalar_lea.vmem %s4410_s11, %s3016_s24 }
  0x10   : > { %567 = vmatpush.msra.mxu0 %v500_v6  ;;  %v479_v17 = vld [vmem:[%s3022_s27 + $0x18] sm:$0xff]  ;;  %v484_v19 = vld [vmem:[%s3022_s27 + $0x40] sm:$0xff]  ;;  %v489_v20 = vld [vmem:[%s3022_s27 + $0x68] sm:$0xff] }
  0x11   : > { %2660 = vmatpush.msra.mxu1 %v500_v6  ;;  %2661 = vmatpush.msra.mxu2 %v500_v6  ;;  %v480_v21 = vld [vmem:[%s3022_s27 + $0x20] sm:$0xff]  ;;  %v485_v22 = vld [vmem:[%s3022_s27 + $0x48] sm:$0xff]  ;;  %v490_v23 = vld [vmem:[%s3022_s27 + $0x70] sm:$0xff] }
  0x12   : > { %568 = vmatpush.msra.mxu0 %v499_v7  ;;  %v481_v24 = vld [vmem:[%s3022_s27 + $0x28] sm:$0xff]  ;;  %v486_v25 = vld [vmem:[%s3022_s27 + $0x50] sm:$0xff]  ;;  %v487_v26 = vld [vmem:[%s3022_s27 + $0x58] sm:$0xff] }
  0x13   : > { %2662 = vmatpush.msra.mxu1 %v499_v7  ;;  %2561 = vmatmul.msk.f32.vlgmr.msra.gmra.mxu0 %vm504_vm1, %v476_v10  ;;  %v491_v27 = vld [vmem:[%s3022_s27 + $0x78] sm:$0xff]  ;;  %v754_v29 = vld [vmem:[%s4403_s4 + $0x10] sm:$0xff]  ;;  %v753_v30 = vld [vmem:[%s4403_s4 + $0x8] sm:$0xff] }
  0x14   : > { %2663 = vmatpush.msra.mxu2 %v499_v7  ;;  %2567 = vmatmul.msk.f32.vlgmr.msra.gmra.mxu1 %vm504_vm1, %v482_v14  ;;  %v752_v31 = vld [vmem:[%s4403_s4] sm:$0xff]  ;;  %v637_v36 = vld [vmem:[%s4402_s3 + $0x18] sm:$0xff]  ;;  %v636_v39 = vld [vmem:[%s4402_s3 + $0x10] sm:$0xff] }
  0x15   : > { %1229 = vmax.xlane.f32.xlu1 %v1228_v12  ;;  %2573 = vmatmul.msk.f32.vlgmr.msra.gmra.mxu2 %vm504_vm1, %v488_v18  ;;  %v635_v40 = vld [vmem:[%s4402_s3 + $0x8] sm:$0xff]  ;;  %v634_v41 = vld [vmem:[%s4402_s3] sm:$0xff] }
  0x16   : > { %1235 = vmax.xlane.f32.xlu0 %v1234_v11  ;;  %769 = vmatpush.msrb.mxu2 %v755_v28  ;;  %v3105_v52 = vld [vmem:[%s4407_s8] ss:$0 sm:$0xff] }
  0x17   : > { %699 = vmatpush.msrb.mxu1 %v637_v36 }
  0x18   : > { %770 = vmatpush.msrb.mxu2 %v754_v29 }
  0x19   : > { %700 = vmatpush.msrb.mxu1 %v636_v39 }
  0x1a   : > { %771 = vmatpush.msrb.mxu2 %v753_v30 }
  0x1b   : > { %2562 = vmatmul.msk.f32.gmra.mxu0 %vm504_vm1, %v477_v13  ;;  %701 = vmatpush.msrb.mxu1 %v635_v40 }
  0x1c   : > { %2568 = vmatmul.msk.f32.gmra.mxu1 %vm504_vm1, %v483_v16  ;;  %772 = vmatpush.msrb.mxu2 %v752_v31 }
  0x1d   : > { %2574 = vmatmul.msk.f32.gmra.mxu2 %vm504_vm1, %v489_v20  ;;  %702 = vmatpush.msrb.mxu1 %v634_v41 }
  0x23   : > { %2563 = vmatmul.msk.f32.gmra.mxu0 %vm504_vm1, %v478_v15 }
  0x24   : > { %2569 = vmatmul.msk.f32.gmra.mxu1 %vm504_vm1, %v484_v19 }
  0x25   : > { %2575 = vmatmul.msk.f32.gmra.mxu2 %vm504_vm1, %v490_v23 }
  0x2b   : > { %2564 = vmatmul.msk.f32.gmra.mxu0 %vm504_vm1, %v479_v17 }
  0x2c   : > { %2570 = vmatmul.msk.f32.gmra.mxu1 %vm504_vm1, %v485_v22 }
  0x2d   : > { %2576 = vmatmul.msk.f32.gmra.mxu2 %vm504_vm1, %v491_v27 }
  0x33   : > { %2565 = vmatmul.msk.f32.gmra.mxu0 %vm504_vm1, %v480_v21 }
  0x34   : > { %2571 = vmatmul.msk.f32.gmra.mxu1 %vm504_vm1, %v486_v25 }
  0x3b   : > { %2566 = vmatmul.msk.f32.gmra.mxu0 %vm504_vm1, %v481_v24 }
  0x3c   : > { %2572 = vmatmul.msk.f32.gmra.mxu1 %vm504_vm1, %v487_v26 }
  0x80   : > { %v1233_v33 = vpop.xlane.xlu1 %1232 }
  0x81   : > { %v1239_v32 = vpop.xlane.xlu0 %1238  ;;  %v3076_v35 = vsub.f32 %v2990_v2, %v1233_v33 }
  0x82   : > { %v3073_v34 = vsub.f32 %v2985_v1, %v1239_v32 }
  0x83   : > { %v1246_v38 = vmul.f32 1.442695, %v3076_v35 }
  0x84   : > { %v1250_v37 = vmul.f32 1.442695, %v3073_v34 }
  0x86   : > { %2682 = vpow2.f32 %v1250_v37 }
  0x87   : > { %2684 = vpow2.f32 %v1246_v38 }
  0x88   : > { %v1230_v43 = vpop.xlane.xlu1 %1229 }
  0x89   : > { %v1236_v42 = vpop.xlane.xlu0 %1235  ;;  %v3096_v45 = vsub.f32 %v3014_v9, %v1230_v43 }
  0x8a   : > { %v3093_v44 = vsub.f32 %v3009_v8, %v1236_v42 }
  0x8b   : > { %v1244_v48 = vmul.f32 1.442695, %v3096_v45 }
  0x8c   : > { %v2683_v46 = vpop.eup %2682  ;;  %v1248_v47 = vmul.f32 1.442695, %v3093_v44 }
  0x8d   : > { %v2685_v49 = vpop.eup %2684  ;;  %v1261_v50 = vsel %vm1227_vm0, %v2683_v46, 0.0 }
  0x8e   : > { %2686 = vpow2.f32 %v1248_v47  ;;  %1262 = vadd.xlane.f32.xlu2 %v1261_v50  ;;  %v1255_v51 = vsel %vm1227_vm0, %v2685_v49, 0.0 }
  0x8f   : > { %2688 = vpow2.f32 %v1244_v48  ;;  %1256 = vadd.xlane.f32.xlu0 %v1255_v51 }
  0x90   : > { %v570_v53 = vpop.f32.mrf.mxu0 }
  0x91   : > { %v571_v54 = vadd.f32 %v3105_v52, %v570_v53  ;;  %v588_v6 = vpop.f32.mrf.mxu1 }
  0x92   : > { %v589_v13 = vadd.f32 %v3105_v52, %v588_v6 }
  0x93   : > { %v618_v56 = vmax.f32 %v571_v54, 0.0 }
  0x94   : > { %v2687_v55 = vpop.eup %2686  ;;  %v624_v14 = vmax.f32 %v589_v13, 0.0 }
  0x95   : > { %v2689_v57 = vpop.eup %2688  ;;  %v1258_v58 = vsel %vm1227_vm0, %v2687_v55, 0.0  ;;  %2593 = vmatmul.msk.f32.vlgmr.msrb.gmra.mxu2 %vm504_vm1, %v618_v56  ;;  %2577 = vmatmul.msk.f32.vlgmr.msrb.gmra.mxu1 %vm504_vm1, %v618_v56 }
  0x96   : > { %1259 = vadd.xlane.f32.xlu2 %v1258_v58  ;;  %v1252_v59 = vsel %vm1227_vm0, %v2689_v57, 0.0 }
  0x97   : > { %1253 = vadd.xlane.f32.xlu1 %v1252_v59 }
  0x98   : > { %v573_v60 = vpop.f32.mrf.mxu0  ;;  %v606_v27 = vpop.f32.mrf.mxu2 }
  0x99   : > { %v574_v61 = vadd.f32 %v3105_v52, %v573_v60  ;;  %v591_v11 = vpop.f32.mrf.mxu1  ;;  %v607_v30 = vadd.f32 %v3105_v52, %v606_v27  ;;  %v3162_v60 = vld [vmem:[%s4407_s8 + $0x1] ss:$0 sm:$0xff] }
  0x9a   : > { %v592_v16 = vadd.f32 %v3105_v52, %v591_v11 }
  0x9b   : > { %v619_v62 = vmax.f32 %v574_v61, 0.0  ;;  %v630_v32 = vmax.f32 %v607_v30, 0.0 }
  0x9c   : > { %v625_v17 = vmax.f32 %v592_v16, 0.0 }
  0x9d   : > { %2594 = vmatmul.msk.f32.gmra.mxu2 %vm504_vm1, %v619_v62  ;;  %2578 = vmatmul.msk.f32.gmra.mxu1 %vm504_vm1, %v619_v62 }
  0xa0   : > { %v576_v63 = vpop.f32.mrf.mxu0  ;;  %v609_v31 = vpop.f32.mrf.mxu2 }
  0xa1   : > { %v577_v0 = vadd.f32 %v3105_v52, %v576_v63  ;;  %v594_v15 = vpop.f32.mrf.mxu1  ;;  %v610_v33 = vadd.f32 %v3105_v52, %v609_v31 }
  0xa2   : > { %v595_v18 = vadd.f32 %v3105_v52, %v594_v15 }
  0xa3   : > { %v620_v1 = vmax.f32 %v577_v0, 0.0  ;;  %v631_v37 = vmax.f32 %v610_v33, 0.0  ;;  %v1284_v33 = vld [vmem:[%s4405_s6] sm:$0xff] }
  0xa4   : > { %v626_v20 = vmax.f32 %v595_v18, 0.0 }
  0xa5   : > { %2595 = vmatmul.msk.f32.gmra.mxu2 %vm504_vm1, %v620_v1  ;;  %2579 = vmatmul.msk.f32.gmra.mxu1 %vm504_vm1, %v620_v1 }
  0xa8   : > { %v579_v2 = vpop.f32.mrf.mxu0  ;;  %v612_v36 = vpop.f32.mrf.mxu2 }
  0xa9   : > { %v580_v3 = vadd.f32 %v3105_v52, %v579_v2  ;;  %v597_v19 = vpop.f32.mrf.mxu1  ;;  %v613_v38 = vadd.f32 %v3105_v52, %v612_v36 }
  0xaa   : > { %v598_v21 = vadd.f32 %v3105_v52, %v597_v19 }
  0xab   : > { %v621_v4 = vmax.f32 %v580_v3, 0.0  ;;  %v632_v41 = vmax.f32 %v613_v38, 0.0 }
  0xac   : > { %v627_v23 = vmax.f32 %v598_v21, 0.0 }
  0xad   : > { %2596 = vmatmul.msk.f32.gmra.mxu2 %vm504_vm1, %v621_v4  ;;  %2580 = vmatmul.msk.f32.gmra.mxu1 %vm504_vm1, %v621_v4 }
  0xb0   : > { %v582_v5 = vpop.f32.mrf.mxu0  ;;  %v615_v42 = vpop.f32.mrf.mxu2 }
  0xb1   : > { %v583_v7 = vadd.f32 %v3105_v52, %v582_v5  ;;  %v600_v22 = vpop.f32.mrf.mxu1  ;;  %v616_v43 = vadd.f32 %v3105_v52, %v615_v42 }
  0xb2   : > { %v601_v24 = vadd.f32 %v3105_v52, %v600_v22 }
  0xb3   : > { %v622_v8 = vmax.f32 %v583_v7, 0.0  ;;  %v633_v53 = vmax.f32 %v616_v43, 0.0 }
  0xb4   : > { %v628_v25 = vmax.f32 %v601_v24, 0.0 }
  0xb5   : > { %2597 = vmatmul.msk.f32.gmra.mxu2 %vm504_vm1, %v622_v8  ;;  %2581 = vmatmul.msk.f32.gmra.mxu1 %vm504_vm1, %v622_v8 }
  0xb8   : > { %v585_v9 = vpop.f32.mrf.mxu0 }
  0xb9   : > { %v586_v10 = vadd.f32 %v3105_v52, %v585_v9  ;;  %v603_v26 = vpop.f32.mrf.mxu1 }
  0xba   : > { %v604_v28 = vadd.f32 %v3105_v52, %v603_v26 }
  0xbb   : > { %v623_v12 = vmax.f32 %v586_v10, 0.0 }
  0xbc   : > { %v629_v29 = vmax.f32 %v604_v28, 0.0 }
  0xbd   : > { %2598 = vmatmul.msk.f32.gmra.mxu2 %vm504_vm1, %v623_v12  ;;  %2582 = vmatmul.msk.f32.gmra.mxu1 %vm504_vm1, %v623_v12 }
  0xc5   : > { %2599 = vmatmul.msk.f32.gmra.mxu2 %vm504_vm1, %v624_v14  ;;  %2583 = vmatmul.msk.f32.gmra.mxu1 %vm504_vm1, %v624_v14 }
  0xcd   : > { %2600 = vmatmul.msk.f32.gmra.mxu2 %vm504_vm1, %v625_v17  ;;  %2584 = vmatmul.msk.f32.gmra.mxu1 %vm504_vm1, %v625_v17 }
  0xd5   : > { %2601 = vmatmul.msk.f32.gmra.mxu2 %vm504_vm1, %v626_v20  ;;  %2585 = vmatmul.msk.f32.gmra.mxu1 %vm504_vm1, %v626_v20 }
  0xdd   : > { %2602 = vmatmul.msk.f32.gmra.mxu2 %vm504_vm1, %v627_v23  ;;  %2586 = vmatmul.msk.f32.gmra.mxu1 %vm504_vm1, %v627_v23 }
  0xe5   : > { %2603 = vmatmul.msk.f32.gmra.mxu2 %vm504_vm1, %v628_v25  ;;  %2587 = vmatmul.msk.f32.gmra.mxu1 %vm504_vm1, %v628_v25 }
  0xed   : > { %2604 = vmatmul.msk.f32.gmra.mxu2 %vm504_vm1, %v629_v29  ;;  %2588 = vmatmul.msk.f32.gmra.mxu1 %vm504_vm1, %v629_v29 }
  0xf5   : > { %2605 = vmatmul.msk.f32.gmra.mxu2 %vm504_vm1, %v630_v32  ;;  %2589 = vmatmul.msk.f32.gmra.mxu1 %vm504_vm1, %v630_v32 }
  0xfd   : > { %2606 = vmatmul.msk.f32.gmra.mxu2 %vm504_vm1, %v631_v37  ;;  %2590 = vmatmul.msk.f32.gmra.mxu1 %vm504_vm1, %v631_v37 }
 0x101   : > { %v1263_v39 = vpop.xlane.xlu2 %1262 }
 0x102   : > { %2690 = vlog2.f32 %v1263_v39  ;;  %v1257_v40 = vpop.xlane.xlu0 %1256 }
 0x103   : > { %2692 = vlog2.f32 %v1257_v40 }
 0x105   : > { %2607 = vmatmul.msk.f32.gmra.mxu2 %vm504_vm1, %v632_v41  ;;  %2591 = vmatmul.msk.f32.gmra.mxu1 %vm504_vm1, %v632_v41 }
 0x108   : > { %v2691_v46 = vpop.eup %2690 }
 0x109   : > { %v2693_v47 = vpop.eup %2692  ;;  %v1271_v48 = vmul.f32 0.6931472, %v2691_v46  ;;  %v1260_v49 = vpop.xlane.xlu2 %1259 }
 0x10a   : > { %v1267_v50 = vmul.f32 0.6931472, %v2693_v47  ;;  %2694 = vlog2.f32 %v1260_v49  ;;  %v1254_v51 = vpop.xlane.xlu1 %1253 }
 0x10b   : > { %v1275_v54 = vsub.f32 %v3073_v34, %v1271_v48  ;;  %2696 = vlog2.f32 %v1254_v51 }
 0x10c   : > { %v1273_v55 = vsub.f32 %v3076_v35, %v1267_v50  ;;  %v1285_v50 = vld [vmem:[%s4405_s6 + $0x8] sm:$0xff] }
 0x10d   : > { %v1282_v56 = vmul.f32 1.442695, %v1275_v54  ;;  %2608 = vmatmul.msk.f32.gmra.mxu2 %vm504_vm1, %v633_v53  ;;  %2592 = vmatmul.msk.f32.gmra.mxu1 %vm504_vm1, %v633_v53  ;;  %v2352_v15 = vadd.f32 1.3862944, %v1275_v54 }
 0x10e   : > { %v1278_v57 = vmul.f32 1.442695, %v1273_v55  ;;  %v2350_v5 = vadd.f32 1.3862944, %v1273_v55 }
 0x10f   : > { %2698 = vpow2.f32 %v1282_v56 }
 0x110   : > { %v2695_v52 = vpop.eup %2694  ;;  %2700 = vpow2.f32 %v1278_v57 }
 0x111   : > { %v2697_v58 = vpop.eup %2696  ;;  %v1269_v59 = vmul.f32 0.6931472, %v2695_v52 }
 0x112   : > { %v1265_v34 = vmul.f32 0.6931472, %v2697_v58  ;;  %v704_v62 = vpop.f32.mrf.mxu1 }
 0x113   : > { %v1274_v61 = vsub.f32 %v3093_v44, %v1269_v59  ;;  %v3173_v1 = vadd.f32 %v3162_v60, %v704_v62  ;;  %v3179_v44 = vld [vmem:[%s4407_s8 + $0x2] ss:$0 sm:$0xff] }
 0x114   : > { %v1272_v35 = vsub.f32 %v3096_v45, %v1265_v34 }
 0x115   : > { %v2699_v63 = vpop.eup %2698  ;;  %v1280_v0 = vmul.f32 1.442695, %v1274_v61  ;;  %1175 = vst.msk [vmem:[%s3170_s18] sm:$0xff] %vm1174_vm2, %v3173_v1  ;;  %v2351_v10 = vadd.f32 1.3862944, %v1274_v61 }
 0x116   : > { %v1276_v2 = vmul.f32 1.442695, %v1272_v35  ;;  %2609 = vmatpush.xpose.msk.msra.mxu3 %vm1227_vm0, %v2699_v63  ;;  %v2701_v3 = vpop.eup %2700  ;;  %v2349_v11 = vadd.f32 1.3862944, %v1272_v35  ;;  %v2356_v20 = vmul.f32 %v2699_v63, %v2352_v15  ;;  %v1364_v35 = vld [vmem:[%s4404_s5] sm:$0xff] }
 0x117   : > { %2702 = vpow2.f32 %v1280_v0  ;;  %v2354_v9 = vmul.f32 %v2701_v3, %v2350_v5 }
 0x118   : > { %2704 = vpow2.f32 %v1276_v2  ;;  %v774_v45 = vpop.f32.mrf.mxu2  ;;  %v2362_v29 = vsel %vm1227_vm0, %v2356_v20, 0.0 }
 0x119   : > { %v3185_v4 = vadd.f32 %v3179_v44, %v774_v45  ;;  %v2358_v22 = vsel %vm1227_vm0, %v2354_v9, 0.0  ;;  %v1126_v9 = vld [vmem:[%s3251_s15] sm:$0xff] }
 0x11a   : > { %v707_v7 = vpop.f32.mrf.mxu1 }
 0x11b   : > { %v870_v6 = vand.u32 2147483647, %v3185_v4  ;;  %v3189_v12 = vadd.f32 %v3162_v60, %v707_v7  ;;  %v822_v61 = vmax.f32 %v3185_v4, 0.0  ;;  %vm838_vm4 = vcmp.ne.f32.partialorder %v3185_v4, %v3185_v4  ;;  %v1286_v7 = vld [vmem:[%s4405_s6 + $0x10] sm:$0xff] }
 0x11d   : > { %v2703_v8 = vpop.eup %2702  ;;  %v886_v14 = vsub.f32 0.0, %v870_v6  ;;  %1176 = vst.msk [vmem:[%s3170_s18 + $0x8] sm:$0xff] %vm1174_vm2, %v3189_v12 }
 0x11e   : > { %v2705_v13 = vpop.eup %2704  ;;  %2610 = vmatpush.xpose.msk.msra.mxu3 %vm1227_vm0, %v2703_v8  ;;  %v2355_v17 = vmul.f32 %v2703_v8, %v2351_v10 }
 0x11f   : > { %v2353_v16 = vmul.f32 %v2705_v13, %v2349_v11  ;;  %v902_v18 = vmul.f32 1.442695, %v886_v14 }
 0x120   : > { %v777_v19 = vpop.f32.mrf.mxu2  ;;  %v2360_v25 = vsel %vm1227_vm0, %v2355_v17, 0.0 }
 0x121   : > { %v2357_v21 = vsel %vm1227_vm0, %v2353_v16, 0.0  ;;  %2706 = vpow2.f32 %v902_v18  ;;  %v3198_v23 = vadd.f32 %v3179_v44, %v777_v19 }
 0x122   : > { %2611 = vmatpush.xpose.msk.msra.mxu3 %vm1227_vm0, %v2701_v3  ;;  %v2359_v24 = vadd.f32 %v2358_v22, %v2357_v21  ;;  %v710_v28 = vpop.f32.mrf.mxu1 }
 0x123   : > { %v871_v26 = vand.u32 2147483647, %v3198_v23  ;;  %v3205_v30 = vadd.f32 %v3162_v60, %v710_v28  ;;  %v823_v22 = vmax.f32 %v3198_v23, 0.0  ;;  %vm839_vm6 = vcmp.ne.f32.partialorder %v3198_v23, %v3198_v23 }
 0x124   : > { %v2361_v27 = vadd.f32 %v2360_v25, %v2359_v24 }
 0x125   : > { %v887_v31 = vsub.f32 0.0, %v871_v26  ;;  %1177 = vst.msk [vmem:[%s3170_s18 + $0x10] sm:$0xff] %vm1174_vm2, %v3205_v30 }
 0x126   : > { %2612 = vmatpush.xpose.msk.msra.mxu3 %vm1227_vm0, %v2705_v13  ;;  %v2363_v32 = vadd.f32 %v2362_v29, %v2361_v27 }
 0x127   : > { %v2707_v36 = vpop.eup %2706  ;;  %v904_v37 = vmul.f32 1.442695, %v887_v31 }
 0x128   : > { %2364 = vadd.xlane.f32.xlu1 %v2363_v32  ;;  %v934_v38 = vadd.f32 1.0, %v2707_v36  ;;  %v937_v39 = vmul.f32 -0.5, %v2707_v36  ;;  %v780_v40 = vpop.f32.mrf.mxu2  ;;  %v940_v47 = vand.u32 2147483647, %v2707_v36 }
 0x129   : > { %2613 = vmatmul.msk.f32.vlgmr.msra.gmra.mxu3 %vm1227_vm0, %v1284_v33  ;;  %2708 = vpow2.f32 %v904_v37  ;;  %v3217_v41 = vadd.f32 %v3179_v44, %v780_v40  ;;  %v1287_v33 = vld [vmem:[%s4405_s6 + $0x18] sm:$0xff] }
 0x12a   : > { %2617 = vmatpush.xpose.msk.msrb.mxu3 %vm1227_vm0, %v2699_v63  ;;  %2710 = vlog2.f32 %v934_v38  ;;  %v938_v42 = vadd.f32 1.0, %v937_v39  ;;  %v713_v46 = vpop.f32.mrf.mxu1  ;;  %vm3231_vm3 = vcmp.lt.f32.partialorder %v940_v47, 0.0004427343  ;;  %v2242_v47 = vmul.f32 %v3189_v12, %v3189_v12 }
 0x12b   : > { %v872_v43 = vand.u32 2147483647, %v3217_v41  ;;  %v3222_v48 = vadd.f32 %v3162_v60, %v713_v46  ;;  %vm840_vm8 = vcmp.ne.f32.partialorder %v3217_v41, %v3217_v41 }
 0x12c   : > { %v939_v53 = vmul.f32 %v2707_v36, %v938_v42 }
 0x12d   : > { %v888_v49 = vsub.f32 0.0, %v872_v43  ;;  %1178 = vst.msk [vmem:[%s3170_s18 + $0x18] sm:$0xff] %vm1174_vm2, %v3222_v48  ;;  %v1127_v43 = vld [vmem:[%s3251_s15 + $0x8] sm:$0xff] }
 0x12e   : > { %2618 = vmatpush.xpose.msk.msrb.mxu3 %vm1227_vm0, %v2703_v8 }
 0x12f   : > { %v2709_v51 = vpop.eup %2708  ;;  %v906_v54 = vmul.f32 1.442695, %v888_v49 }
 0x130   : > { %v2711_v55 = vpop.eup %2710  ;;  %v943_v52 = vadd.f32 1.0, %v2709_v51  ;;  %v946_v57 = vmul.f32 -0.5, %v2709_v51  ;;  %v783_v58 = vpop.f32.mrf.mxu2 }
 0x131   : > { %2614 = vmatmul.msk.f32.gmra.mxu3 %vm1227_vm0, %v1285_v50  ;;  %v936_v59 = vmul.f32 0.6931472, %v2711_v55  ;;  %2712 = vpow2.f32 %v906_v54  ;;  %v3237_v34 = vadd.f32 %v3179_v44, %v783_v58  ;;  %v824_v55 = vmax.f32 %v3217_v41, 0.0 }
 0x132   : > { %2619 = vmatpush.xpose.msk.msrb.mxu3 %vm1227_vm0, %v2701_v3  ;;  %2714 = vlog2.f32 %v943_v52  ;;  %v947_v63 = vadd.f32 1.0, %v946_v57  ;;  %v716_v2 = vpop.f32.mrf.mxu1  ;;  %v949_v3 = vand.u32 2147483647, %v2709_v51 }
 0x133   : > { %v942_v62 = vsel %vm3231_vm3, %v939_v53, %v936_v59  ;;  %v873_v0 = vand.u32 2147483647, %v3237_v34  ;;  %v3254_v5 = vadd.f32 %v3162_v60, %v716_v2  ;;  %vm841_vm10 = vcmp.ne.f32.partialorder %v3237_v34, %v3237_v34 }
 0x134   : > { %v1078_v45 = vadd.f32 %v942_v62, %v822_v61  ;;  %vm3274_vm5 = vcmp.lt.f32.partialorder %v949_v3, 0.0004427343 }
 0x135   : > { %v889_v6 = vsub.f32 0.0, %v873_v0  ;;  %1179 = vst.msk [vmem:[%s3170_s18 + $0x20] sm:$0xff] %vm1174_vm2, %v3254_v5  ;;  %v496_v0 = vld [vmem:[%s4407_s8 + $0x4] sm:$0x1] }
 0x136   : > { %2620 = vmatpush.xpose.msk.msrb.mxu3 %vm1227_vm0, %v2705_v13  ;;  %v1094_v8 = vsel %vm838_vm4, %v3185_v4, %v1078_v45  ;;  %v948_v13 = vmul.f32 %v2709_v51, %v947_v63 }
 0x137   : > { %v2713_v10 = vpop.eup %2712  ;;  %v3272_v11 = vadd.f32 1e-06, %v1094_v8  ;;  %v908_v14 = vmul.f32 1.442695, %v889_v6 }
 0x138   : > { %v2715_v15 = vpop.eup %2714  ;;  %v952_v17 = vadd.f32 1.0, %v2713_v10  ;;  %v955_v18 = vmul.f32 -0.5, %v2713_v10  ;;  %v786_v19 = vpop.f32.mrf.mxu2  ;;  %v958_v29 = vand.u32 2147483647, %v2713_v10 }
 0x139   : > { %2615 = vmatmul.msk.f32.gmra.mxu3 %vm1227_vm0, %v1286_v7  ;;  %1191 = vst.msk [vmem:[%s3265_s23] sm:$0xff] %vm1174_vm2, %v3272_v11  ;;  %v945_v4 = vmul.f32 0.6931472, %v2715_v15  ;;  %2716 = vpow2.f32 %v908_v14  ;;  %v3283_v20 = vadd.f32 %v3179_v44, %v786_v19  ;;  %v1142_v21 = vmul.f32 %v1126_v9, %v3272_v11 }
 0x13a   : > { %1429 = vmatpush.msra.mxu3 %v1364_v35  ;;  %2718 = vlog2.f32 %v952_v17  ;;  %v956_v25 = vadd.f32 1.0, %v955_v18  ;;  %v719_v27 = vpop.f32.mrf.mxu1  ;;  %vm3318_vm7 = vcmp.lt.f32.partialorder %v958_v29, 0.0004427343 }
 0x13b   : > { %v951_v24 = vsel %vm3274_vm5, %v948_v13, %v945_v4  ;;  %v874_v26 = vand.u32 2147483647, %v3283_v20  ;;  %v3297_v31 = vadd.f32 %v1142_v21, %v3173_v1  ;;  %2720 = vlog2.f32 %v3272_v11 }
 0x13c   : > { %v1079_v28 = vadd.f32 %v951_v24, %v823_v22  ;;  %v3306_v36 = vadd.f32 %v3162_v60, %v719_v27  ;;  %v957_v40 = vmul.f32 %v2713_v10, %v956_v25  ;;  %v2241_v13 = vmul.f32 %v3173_v1, %v3173_v1  ;;  %v1128_v25 = vld [vmem:[%s3251_s15 + $0x10] sm:$0xff] }
 0x13d   : > { %v890_v32 = vsub.f32 0.0, %v874_v26  ;;  %1207 = vst.msk [vmem:[%s3294_s28] sm:$0xff] %vm1174_vm2, %v3297_v31  ;;  %v825_v21 = vmax.f32 %v3237_v34, 0.0  ;;  %v2273_v24 = vmul.f32 %v3272_v11, %v3272_v11  ;;  %vm842_vm12 = vcmp.ne.f32.partialorder %v3283_v20, %v3283_v20 }
 0x13e   : > { %v1095_v37 = vsel %vm839_vm6, %v3198_v23, %v1079_v28  ;;  %1180 = vst.msk [vmem:[%s3170_s18 + $0x28] sm:$0xff] %vm1174_vm2, %v3306_v36 }
 0x13f   : > { %v2717_v38 = vpop.eup %2716  ;;  %v3312_v39 = vadd.f32 1e-06, %v1095_v37  ;;  %v910_v42 = vmul.f32 1.442695, %v890_v32 }
 0x140   : > { %v2719_v46 = vpop.eup %2718  ;;  %v961_v49 = vadd.f32 1.0, %v2717_v38  ;;  %v964_v50 = vmul.f32 -0.5, %v2717_v38  ;;  %v789_v23 = vpop.f32.mrf.mxu2  ;;  %v967_v35 = vand.u32 2147483647, %v2717_v38 }
 0x141   : > { %2616 = vmatmul.msk.f32.gmra.mxu3 %vm1227_vm0, %v1287_v33  ;;  %1192 = vst.msk [vmem:[%s3265_s23 + $0x8] sm:$0xff] %vm1174_vm2, %v3312_v39  ;;  %v954_v51 = vmul.f32 0.6931472, %v2719_v46  ;;  %2722 = vpow2.f32 %v910_v42  ;;  %v3327_v53 = vadd.f32 %v3179_v44, %v789_v23  ;;  %v2721_v54 = vpop.eup %2720  ;;  %v1143_v56 = vmul.f32 %v1127_v43, %v3312_v39 }
 0x142   : > { %2724 = vlog2.f32 %v961_v49  ;;  %v965_v57 = vadd.f32 1.0, %v964_v50  ;;  %v722_v59 = vpop.f32.mrf.mxu1  ;;  %v2178_v62 = vmul.f32 0.6931472, %v2721_v54  ;;  %vm3354_vm9 = vcmp.lt.f32.partialorder %v967_v35, 0.0004427343 }
 0x143   : > { %v960_v52 = vsel %vm3318_vm7, %v957_v40, %v954_v51  ;;  %v875_v58 = vand.u32 2147483647, %v3327_v53  ;;  %2726 = vlog2.f32 %v3312_v39  ;;  %v3341_v2 = vadd.f32 %v1143_v56, %v3189_v12 }
 0x144   : > { %v1080_v61 = vadd.f32 %v960_v52, %v824_v55  ;;  %v3344_v45 = vadd.f32 %v3162_v60, %v722_v59  ;;  %v2209_v6 = vmul.f32 2.0, %v2178_v62  ;;  %v966_v9 = vmul.f32 %v2717_v38, %v965_v57 }
 0x145   : > { %v891_v63 = vsub.f32 0.0, %v875_v58  ;;  %1208 = vst.msk [vmem:[%s3294_s28 + $0x8] sm:$0xff] %vm1174_vm2, %v3341_v2  ;;  %v3387_v49 = vmul.f32 %v3205_v30, %v3205_v30  ;;  %vm843_vm14 = vcmp.ne.f32.partialorder %v3327_v53, %v3327_v53 }
 0x146   : > { %v1096_v3 = vsel %vm840_vm8, %v3217_v41, %v1080_v61  ;;  %v2225_v17 = vadd.f32 1.0, %v2209_v6  ;;  %1181 = vst.msk [vmem:[%s3170_s18 + $0x30] sm:$0xff] %vm1174_vm2, %v3344_v45 }
 0x147   : > { %v2723_v7 = vpop.eup %2722  ;;  %v3347_v8 = vadd.f32 1e-06, %v1096_v3  ;;  %v912_v10 = vmul.f32 1.442695, %v891_v63  ;;  %v2274_v63 = vmul.f32 %v3312_v39, %v3312_v39 }
 0x148   : > { %v2725_v14 = vpop.eup %2724  ;;  %v970_v41 = vadd.f32 1.0, %v2723_v7  ;;  %v973_v16 = vmul.f32 -0.5, %v2723_v7  ;;  %v792_v18 = vpop.f32.mrf.mxu2  ;;  %v2257_v22 = vsub.f32 %v2225_v17, %v2241_v13  ;;  %v976_v33 = vand.u32 2147483647, %v2723_v7 }
 0x149   : > { %2621 = vmatmul.msk.f32.vlgmr.msrb.gmra.mxu3 %vm1227_vm0, %v496_v0  ;;  %1193 = vst.msk [vmem:[%s3265_s23 + $0x10] sm:$0xff] %vm1174_vm2, %v3347_v8  ;;  %v963_v1 = vmul.f32 0.6931472, %v2725_v14  ;;  %2728 = vpow2.f32 %v912_v10  ;;  %v3366_v19 = vadd.f32 %v3179_v44, %v792_v18  ;;  %v2727_v4 = vpop.eup %2726  ;;  %v1144_v11 = vmul.f32 %v1128_v25, %v3347_v8 }
 0x14a   : > { %2730 = vlog2.f32 %v970_v41  ;;  %v974_v27 = vadd.f32 1.0, %v973_v16  ;;  %v725_v29 = vpop.f32.mrf.mxu1  ;;  %v2289_v37 = vsub.f32 %v2257_v22, %v2273_v24  ;;  %v2180_v38 = vmul.f32 0.6931472, %v2727_v4 }
 0x14b   : > { %v969_v26 = vsel %vm3354_vm9, %v966_v9, %v963_v1  ;;  %v876_v28 = vand.u32 2147483647, %v3366_v19  ;;  %2732 = vlog2.f32 %v3347_v8  ;;  %v3380_v42 = vadd.f32 %v3162_v60, %v725_v29 }
 0x14c   : > { %v1081_v32 = vadd.f32 %v969_v26, %v825_v21  ;;  %v2210_v46 = vmul.f32 2.0, %v2180_v38  ;;  %v975_v51 = vmul.f32 %v2723_v7, %v974_v27  ;;  %v3392_v55 = vadd.f32 %v1144_v11, %v3205_v30 }
 0x14d   : > { %v892_v40 = vsub.f32 0.0, %v876_v28  ;;  %1182 = vst.msk [vmem:[%s3170_s18 + $0x38] sm:$0xff] %vm1174_vm2, %v3380_v42  ;;  %vm3397_vm11 = vcmp.lt.f32.partialorder %v976_v33, 0.0004427343  ;;  %v826_v30 = vmax.f32 %v3283_v20, 0.0  ;;  %v2305_v6 = vsel %vm1174_vm2, %v2289_v37, 0.0 }
 0x14e   : > { %v1097_v43 = vsel %vm841_vm10, %v3237_v34, %v1081_v32  ;;  %v2226_v57 = vadd.f32 1.0, %v2210_v46  ;;  %1209 = vst.msk [vmem:[%s3294_s28 + $0x10] sm:$0xff] %vm1174_vm2, %v3392_v55  ;;  %v827_v37 = vmax.f32 %v3327_v53, 0.0  ;;  %v2275_v46 = vmul.f32 %v3347_v8, %v3347_v8 }
 0x14f   : > { %v2729_v50 = vpop.eup %2728  ;;  %v3389_v23 = vadd.f32 1e-06, %v1097_v43  ;;  %v914_v54 = vmul.f32 1.442695, %v892_v40  ;;  %vm844_vm0 = vcmp.ne.f32.partialorder %v3366_v19, %v3366_v19 }
 0x150   : > { %v2731_v34 = vpop.eup %2730  ;;  %v979_v12 = vadd.f32 1.0, %v2729_v50  ;;  %v982_v52 = vmul.f32 -0.5, %v2729_v50  ;;  %v795_v58 = vpop.f32.mrf.mxu2  ;;  %v2258_v62 = vsub.f32 %v2226_v57, %v2242_v47  ;;  %v985_v13 = vand.u32 2147483647, %v2729_v50 }
 0x151   : > { %2622 = vmatmul.msk.f32.vlgmr.msra.gmra.mxu3 %vm1174_vm2, %v3297_v31  ;;  %1194 = vst.msk [vmem:[%s3265_s23 + $0x18] sm:$0xff] %vm1174_vm2, %v3389_v23  ;;  %v972_v59 = vmul.f32 0.6931472, %v2731_v34  ;;  %2734 = vpow2.f32 %v914_v54  ;;  %v3408_v61 = vadd.f32 %v3179_v44, %v795_v58  ;;  %v1129_v31 = vld [vmem:[%s3251_s15 + $0x18] sm:$0xff]  ;;  %v2733_v0 = vpop.eup %2732  ;;  %v2244_v54 = vmul.f32 %v3222_v48, %v3222_v48 }
 0x152   : > { %2736 = vlog2.f32 %v979_v12  ;;  %v983_v35 = vadd.f32 1.0, %v982_v52  ;;  %v728_v9 = vpop.f32.mrf.mxu1  ;;  %v2290_v39 = vsub.f32 %v2258_v62, %v2274_v63  ;;  %v2182_v14 = vmul.f32 0.6931472, %v2733_v0 }
 0x153   : > { %v978_v3 = vsel %vm3397_vm11, %v975_v51, %v972_v59  ;;  %v877_v7 = vand.u32 2147483647, %v3408_v61  ;;  %2738 = vlog2.f32 %v3389_v23  ;;  %v1145_v41 = vmul.f32 %v1129_v31, %v3389_v23 }
 0x154   : > { %v1082_v10 = vadd.f32 %v978_v3, %v826_v30  ;;  %v3425_v16 = vadd.f32 %v3162_v60, %v728_v9  ;;  %v984_v18 = vmul.f32 %v2729_v50, %v983_v35  ;;  %v2306_v1 = vsel %vm1174_vm2, %v2290_v39, 0.0 }
 0x155   : > { %v893_v15 = vsub.f32 0.0, %v877_v7  ;;  %v2211_v4 = vmul.f32 2.0, %v2182_v14  ;;  %v2307_v24 = vadd.f32 %v2306_v1, %v2305_v6  ;;  %v3432_v26 = vadd.f32 %v1145_v41, %v3222_v48 }
 0x156   : > { %v1098_v17 = vsel %vm842_vm12, %v3283_v20, %v1082_v10  ;;  %1183 = vst.msk [vmem:[%s3170_s18 + $0x40] sm:$0xff] %vm1174_vm2, %v3425_v16  ;;  %vm3437_vm13 = vcmp.lt.f32.partialorder %v985_v13, 0.0004427343  ;;  %v828_v39 = vmax.f32 %v3366_v19, 0.0  ;;  %vm845_vm4 = vcmp.ne.f32.partialorder %v3408_v61, %v3408_v61 }
 0x157   : > { %v2735_v21 = vpop.eup %2734  ;;  %v3429_v22 = vadd.f32 1e-06, %v1098_v17  ;;  %v916_v25 = vmul.f32 1.442695, %v893_v15  ;;  %v2227_v32 = vadd.f32 1.0, %v2211_v4  ;;  %1210 = vst.msk [vmem:[%s3294_s28 + $0x18] sm:$0xff] %vm1174_vm2, %v3432_v26 }
 0x158   : > { %v2737_v27 = vpop.eup %2736  ;;  %v988_v28 = vadd.f32 1.0, %v2735_v21  ;;  %v991_v29 = vmul.f32 -0.5, %v2735_v21  ;;  %v798_v33 = vpop.f32.mrf.mxu2  ;;  %v994_v56 = vand.u32 2147483647, %v2735_v21 }
 0x159   : > { %2623 = vmatmul.msk.f32.gmra.mxu3 %vm1174_vm2, %v3341_v2  ;;  %1195 = vst.msk [vmem:[%s3265_s23 + $0x20] sm:$0xff] %vm1174_vm2, %v3429_v22  ;;  %v981_v38 = vmul.f32 0.6931472, %v2737_v27  ;;  %2740 = vpow2.f32 %v916_v25  ;;  %v3448_v40 = vadd.f32 %v3179_v44, %v798_v33  ;;  %v2259_v43 = vsub.f32 %v2227_v32, %v3387_v49  ;;  %v1130_v2 = vld [vmem:[%s3251_s15 + $0x20] sm:$0xff]  ;;  %v2739_v47 = vpop.eup %2738 }
 0x15a   : > { %2742 = vlog2.f32 %v988_v28  ;;  %v992_v11 = vadd.f32 1.0, %v991_v29  ;;  %v731_v49 = vpop.f32.mrf.mxu1  ;;  %v2184_v12 = vmul.f32 0.6931472, %v2739_v47  ;;  %v1146_v58 = vmul.f32 %v1130_v2, %v3429_v22 }
 0x15b   : > { %v987_v50 = vsel %vm3437_vm13, %v984_v18, %v981_v38  ;;  %v878_v51 = vand.u32 2147483647, %v3448_v40  ;;  %v2291_v8 = vsub.f32 %v2259_v43, %v2275_v46  ;;  %2744 = vlog2.f32 %v3429_v22 }
 0x15c   : > { %v1083_v34 = vadd.f32 %v987_v50, %v827_v37  ;;  %v993_v52 = vmul.f32 %v2735_v21, %v992_v11  ;;  %v2212_v35 = vmul.f32 2.0, %v2184_v12  ;;  %v3469_v48 = vadd.f32 %v3162_v60, %v731_v49 }
 0x15d   : > { %v894_v57 = vsub.f32 0.0, %v878_v51  ;;  %v2308_v59 = vsel %vm1174_vm2, %v2291_v8, 0.0  ;;  %v3474_v3 = vadd.f32 %v1146_v58, %v3254_v5  ;;  %vm3476_vm15 = vcmp.lt.f32.partialorder %v994_v56, 0.0004427343 }
 0x15e   : > { %v1099_v30 = vsel %vm843_vm14, %v3327_v53, %v1083_v34  ;;  %v2309_v31 = vadd.f32 %v2308_v59, %v2307_v24  ;;  %v2228_v10 = vadd.f32 1.0, %v2212_v35  ;;  %1184 = vst.msk [vmem:[%s3170_s18 + $0x48] sm:$0xff] %vm1174_vm2, %v3469_v48  ;;  %v2276_v18 = vmul.f32 %v3389_v23, %v3389_v23 }
 0x15f   : > { %v2741_v62 = vpop.eup %2740  ;;  %v3471_v63 = vadd.f32 1e-06, %v1099_v30  ;;  %v918_v0 = vmul.f32 1.442695, %v894_v57  ;;  %1211 = vst.msk [vmem:[%s3294_s28 + $0x20] sm:$0xff] %vm1174_vm2, %v3474_v3  ;;  %v2245_v24 = vmul.f32 %v3254_v5, %v3254_v5  ;;  %v829_v8 = vmax.f32 %v3408_v61, 0.0 }
 0x160   : > { %v2743_v6 = vpop.eup %2742  ;;  %v997_v53 = vadd.f32 1.0, %v2741_v62  ;;  %v1000_v9 = vmul.f32 -0.5, %v2741_v62  ;;  %v801_v13 = vpop.f32.mrf.mxu2  ;;  %v2260_v17 = vsub.f32 %v2228_v10, %v2244_v54  ;;  %v1003_v20 = vand.u32 2147483647, %v2741_v62 }
 0x161   : > { %2624 = vmatmul.msk.f32.gmra.mxu3 %vm1174_vm2, %v3392_v55  ;;  %1196 = vst.msk [vmem:[%s3265_s23 + $0x28] sm:$0xff] %vm1174_vm2, %v3471_v63  ;;  %v990_v14 = vmul.f32 0.6931472, %v2743_v6  ;;  %2746 = vpow2.f32 %v918_v0  ;;  %v3490_v15 = vadd.f32 %v3179_v44, %v801_v13  ;;  %v1131_v55 = vld [vmem:[%s3251_s15 + $0x28] sm:$0xff]  ;;  %v2745_v1 = vpop.eup %2744  ;;  %v2277_v30 = vmul.f32 %v3429_v22, %v3429_v22 }
 0x162   : > { %2748 = vlog2.f32 %v997_v53  ;;  %v1001_v41 = vadd.f32 1.0, %v1000_v9  ;;  %v734_v25 = vpop.f32.mrf.mxu1  ;;  %v2292_v23 = vsub.f32 %v2260_v17, %v2276_v18  ;;  %v2186_v28 = vmul.f32 0.6931472, %v2745_v1 }
 0x163   : > { %v996_v4 = vsel %vm3476_vm15, %v993_v52, %v990_v14  ;;  %v879_v21 = vand.u32 2147483647, %v3490_v15  ;;  %2750 = vlog2.f32 %v3471_v63  ;;  %v1147_v33 = vmul.f32 %v1131_v55, %v3471_v63 }
 0x164   : > { %v1084_v27 = vadd.f32 %v996_v4, %v828_v39  ;;  %v1002_v29 = vmul.f32 %v2741_v62, %v1001_v41  ;;  %v2310_v38 = vsel %vm1174_vm2, %v2292_v23, 0.0  ;;  %v2213_v11 = vmul.f32 2.0, %v2186_v28 }
 0x165   : > { %v895_v32 = vsub.f32 0.0, %v879_v21  ;;  %v3510_v5 = vadd.f32 %v3162_v60, %v734_v25  ;;  %v2311_v2 = vadd.f32 %v2310_v38, %v2309_v31  ;;  %v3515_v50 = vadd.f32 %v1147_v33, %v3306_v36 }
 0x166   : > { %v1100_v37 = vsel %vm844_vm0, %v3366_v19, %v1084_v27  ;;  %vm3517_vm3 = vcmp.lt.f32.partialorder %v1003_v20, 0.0004427343  ;;  %v2229_v34 = vadd.f32 1.0, %v2213_v11  ;;  %v2246_v31 = vmul.f32 %v3306_v36, %v3306_v36 }
 0x167   : > { %v2747_v43 = vpop.eup %2746  ;;  %v3512_v46 = vadd.f32 1e-06, %v1100_v37  ;;  %v920_v47 = vmul.f32 1.442695, %v895_v32  ;;  %1185 = vst.msk [vmem:[%s3170_s18 + $0x50] sm:$0xff] %vm1174_vm2, %v3510_v5  ;;  %v830_v23 = vmax.f32 %v3448_v40, 0.0  ;;  %v2278_v37 = vmul.f32 %v3471_v63, %v3471_v63 }
 0x168   : > { %v2749_v51 = vpop.eup %2748  ;;  %v1006_v19 = vadd.f32 1.0, %v2747_v43  ;;  %v1009_v49 = vmul.f32 -0.5, %v2747_v43  ;;  %v804_v56 = vpop.f32.mrf.mxu2  ;;  %v2261_v58 = vsub.f32 %v2229_v34, %v2245_v24  ;;  %1212 = vst.msk [vmem:[%s3294_s28 + $0x28] sm:$0xff] %vm1174_vm2, %v3515_v50  ;;  %v1012_v7 = vand.u32 2147483647, %v2747_v43 }
 0x169   : > { %2625 = vmatmul.msk.f32.gmra.mxu3 %vm1174_vm2, %v3432_v26  ;;  %1197 = vst.msk [vmem:[%s3265_s23 + $0x30] sm:$0xff] %vm1174_vm2, %v3512_v46  ;;  %v999_v12 = vmul.f32 0.6931472, %v2749_v51  ;;  %2752 = vpow2.f32 %v920_v47  ;;  %v3531_v52 = vadd.f32 %v3179_v44, %v804_v56  ;;  %v1132_v26 = vld [vmem:[%s3251_s15 + $0x30] sm:$0xff]  ;;  %v2751_v59 = vpop.eup %2750  ;;  %vm846_vm6 = vcmp.ne.f32.partialorder %v3448_v40, %v3448_v40 }
 0x16a   : > { %2754 = vlog2.f32 %v1006_v19  ;;  %v1010_v57 = vadd.f32 1.0, %v1009_v49  ;;  %v737_v0 = vpop.f32.mrf.mxu1  ;;  %v2293_v22 = vsub.f32 %v2261_v58, %v2277_v30  ;;  %v2188_v53 = vmul.f32 0.6931472, %v2751_v59 }
 0x16b   : > { %v1005_v35 = vsel %vm3517_vm3, %v1002_v29, %v999_v12  ;;  %v880_v62 = vand.u32 2147483647, %v3531_v52  ;;  %2756 = vlog2.f32 %v3512_v46  ;;  %v1148_v13 = vmul.f32 %v1132_v26, %v3512_v46 }
 0x16c   : > { %v1085_v6 = vadd.f32 %v1005_v35, %v829_v8  ;;  %v1011_v9 = vmul.f32 %v2747_v43, %v1010_v57  ;;  %v2312_v14 = vsel %vm1174_vm2, %v2293_v22, 0.0  ;;  %v2214_v41 = vmul.f32 2.0, %v2188_v53 }
 0x16d   : > { %v896_v10 = vsub.f32 0.0, %v880_v62  ;;  %v3551_v36 = vadd.f32 %v3162_v60, %v737_v0  ;;  %v2313_v55 = vadd.f32 %v2312_v14, %v2311_v2  ;;  %v3556_v4 = vadd.f32 %v1148_v13, %v3344_v45 }
 0x16e   : > { %v1101_v39 = vsel %vm845_vm4, %v3408_v61, %v1085_v6  ;;  %vm3558_vm5 = vcmp.lt.f32.partialorder %v1012_v7, 0.0004427343  ;;  %v2230_v27 = vadd.f32 1.0, %v2214_v41  ;;  %v2247_v2 = vmul.f32 %v3344_v45, %v3344_v45 }
 0x16f   : > { %v2753_v17 = vpop.eup %2752  ;;  %v3553_v18 = vadd.f32 1e-06, %v1101_v39  ;;  %v922_v1 = vmul.f32 1.442695, %v896_v10  ;;  %1186 = vst.msk [vmem:[%s3170_s18 + $0x58] sm:$0xff] %vm1174_vm2, %v3551_v36  ;;  %v831_v22 = vmax.f32 %v3490_v15, 0.0  ;;  %v2279_v39 = vmul.f32 %v3512_v46, %v3512_v46 }
 0x170   : > { %v2755_v21 = vpop.eup %2754  ;;  %v1015_v61 = vadd.f32 1.0, %v2753_v17  ;;  %v1018_v25 = vmul.f32 -0.5, %v2753_v17  ;;  %v807_v20 = vpop.f32.mrf.mxu2  ;;  %v2262_v33 = vsub.f32 %v2230_v27, %v2246_v31  ;;  %1213 = vst.msk [vmem:[%s3294_s28 + $0x30] sm:$0xff] %vm1174_vm2, %v3556_v4  ;;  %v1021_v54 = vand.u32 2147483647, %v2753_v17 }
 0x171   : > { %2626 = vmatmul.msk.f32.gmra.mxu3 %vm1174_vm2, %v3474_v3  ;;  %1198 = vst.msk [vmem:[%s3265_s23 + $0x38] sm:$0xff] %vm1174_vm2, %v3553_v18  ;;  %v1008_v28 = vmul.f32 0.6931472, %v2755_v21  ;;  %2758 = vpow2.f32 %v922_v1  ;;  %v3572_v29 = vadd.f32 %v3179_v44, %v807_v20  ;;  %v1133_v3 = vld [vmem:[%s3251_s15 + $0x38] sm:$0xff]  ;;  %v2757_v38 = vpop.eup %2756  ;;  %vm847_vm8 = vcmp.ne.f32.partialorder %v3490_v15, %v3490_v15 }
 0x172   : > { %2760 = vlog2.f32 %v1015_v61  ;;  %v1019_v32 = vadd.f32 1.0, %v1018_v25  ;;  %v740_v47 = vpop.f32.mrf.mxu1  ;;  %v2294_v63 = vsub.f32 %v2262_v33, %v2278_v37  ;;  %v2190_v19 = vmul.f32 0.6931472, %v2757_v38 }
 0x173   : > { %v1014_v11 = vsel %vm3558_vm5, %v1011_v9, %v1008_v28  ;;  %v881_v43 = vand.u32 2147483647, %v3572_v29  ;;  %2762 = vlog2.f32 %v3553_v18  ;;  %v1149_v56 = vmul.f32 %v1133_v3, %v3553_v18 }
 0x174   : > { %v1086_v51 = vadd.f32 %v1014_v11, %v830_v23  ;;  %v1020_v49 = vmul.f32 %v2753_v17, %v1019_v32  ;;  %v2314_v12 = vsel %vm1174_vm2, %v2294_v63, 0.0  ;;  %v2215_v57 = vmul.f32 2.0, %v2190_v19 }
 0x175   : > { %v897_v34 = vsub.f32 0.0, %v881_v43  ;;  %v3592_v45 = vadd.f32 %v3162_v60, %v740_v47  ;;  %v2315_v26 = vadd.f32 %v2314_v12, %v2313_v55  ;;  %v3597_v35 = vadd.f32 %v1149_v56, %v3380_v42 }
 0x176   : > { %v1102_v8 = vsel %vm846_vm6, %v3448_v40, %v1086_v51  ;;  %vm3599_vm7 = vcmp.lt.f32.partialorder %v1021_v54, 0.0004427343  ;;  %v2231_v6 = vadd.f32 1.0, %v2215_v57  ;;  %v2248_v55 = vmul.f32 %v3380_v42, %v3380_v42 }
 0x177   : > { %v2759_v58 = vpop.eup %2758  ;;  %v3594_v30 = vadd.f32 1e-06, %v1102_v8  ;;  %v924_v59 = vmul.f32 1.442695, %v897_v34  ;;  %1187 = vst.msk [vmem:[%s3170_s18 + $0x60] sm:$0xff] %vm1174_vm2, %v3592_v45  ;;  %v832_v63 = vmax.f32 %v3531_v52, 0.0  ;;  %v2280_v8 = vmul.f32 %v3553_v18, %v3553_v18 }
 0x178   : > { %v2761_v62 = vpop.eup %2760  ;;  %v1024_v40 = vadd.f32 1.0, %v2759_v58  ;;  %v1027_v0 = vmul.f32 -0.5, %v2759_v58  ;;  %v810_v7 = vpop.f32.mrf.mxu2  ;;  %v2263_v13 = vsub.f32 %v2231_v6, %v2247_v2  ;;  %1214 = vst.msk [vmem:[%s3294_s28 + $0x38] sm:$0xff] %vm1174_vm2, %v3597_v35  ;;  %v1030_v24 = vand.u32 2147483647, %v2759_v58 }
 0x179   : > { %2627 = vmatmul.msk.f32.gmra.mxu3 %vm1174_vm2, %v3515_v50  ;;  %1199 = vst.msk [vmem:[%s3265_s23 + $0x40] sm:$0xff] %vm1174_vm2, %v3594_v30  ;;  %v1017_v53 = vmul.f32 0.6931472, %v2761_v62  ;;  %2764 = vpow2.f32 %v924_v59  ;;  %v3613_v9 = vadd.f32 %v3179_v44, %v810_v7  ;;  %v1134_v50 = vld [vmem:[%s3251_s15 + $0x40] sm:$0xff]  ;;  %v2763_v14 = vpop.eup %2762  ;;  %vm848_vm10 = vcmp.ne.f32.partialorder %v3531_v52, %v3531_v52 }
 0x17a   : > { %2766 = vlog2.f32 %v1024_v40  ;;  %v1028_v10 = vadd.f32 1.0, %v1027_v0  ;;  %v743_v1 = vpop.f32.mrf.mxu1  ;;  %v2295_v46 = vsub.f32 %v2263_v13, %v2279_v39  ;;  %v2192_v61 = vmul.f32 0.6931472, %v2763_v14 }
 0x17b   : > { %v1023_v41 = vsel %vm3599_vm7, %v1020_v49, %v1017_v53  ;;  %v882_v17 = vand.u32 2147483647, %v3613_v9  ;;  %2768 = vlog2.f32 %v3594_v30  ;;  %v1150_v20 = vmul.f32 %v1134_v50, %v3594_v30 }
 0x17c   : > { %v1087_v21 = vadd.f32 %v1023_v41, %v831_v22  ;;  %v1029_v25 = vmul.f32 %v2759_v58, %v1028_v10  ;;  %v2316_v28 = vsel %vm1174_vm2, %v2295_v46, 0.0  ;;  %v2216_v32 = vmul.f32 2.0, %v2192_v61  ;;  %v2878_v46 = vld [vmem:[%s4407_s8 + $0x2] ss:$0 sm:$0xff] }
 0x17d   : > { %v898_v27 = vsub.f32 0.0, %v882_v17  ;;  %v3633_v42 = vadd.f32 %v3162_v60, %v743_v1  ;;  %v2317_v3 = vadd.f32 %v2316_v28, %v2315_v26  ;;  %v3638_v11 = vadd.f32 %v1150_v20, %v3425_v16  ;;  %v1136_v20 = vld [vmem:[%s3251_s15 + $0x50] sm:$0xff] }
 0x17e   : > { %v1103_v23 = vsel %vm847_vm8, %v3490_v15, %v1087_v21  ;;  %vm3640_vm9 = vcmp.lt.f32.partialorder %v1030_v24, 0.0004427343  ;;  %v2232_v51 = vadd.f32 1.0, %v2216_v32  ;;  %v2249_v58 = vmul.f32 %v3425_v16, %v3425_v16 }
 0x17f   : > { %v2765_v33 = vpop.eup %2764  ;;  %v3635_v37 = vadd.f32 1e-06, %v1103_v23  ;;  %v926_v38 = vmul.f32 1.442695, %v898_v27  ;;  %1188 = vst.msk [vmem:[%s3170_s18 + $0x68] sm:$0xff] %vm1174_vm2, %v3633_v42  ;;  %v833_v21 = vmax.f32 %v3572_v29, 0.0  ;;  %vm849_vm12 = vcmp.ne.f32.partialorder %v3572_v29, %v3572_v29 }
 0x180   : > { %v2767_v43 = vpop.eup %2766  ;;  %v1033_v15 = vadd.f32 1.0, %v2765_v33  ;;  %v1036_v47 = vmul.f32 -0.5, %v2765_v33  ;;  %v813_v54 = vpop.f32.mrf.mxu2  ;;  %v2264_v56 = vsub.f32 %v2232_v51, %v2248_v55  ;;  %1215 = vst.msk [vmem:[%s3294_s28 + $0x40] sm:$0xff] %vm1174_vm2, %v3638_v11  ;;  %v1039_v62 = vand.u32 2147483647, %v2765_v33 }
 0x181   : > { %2628 = vmatmul.msk.f32.gmra.mxu3 %vm1174_vm2, %v3556_v4  ;;  %1200 = vst.msk [vmem:[%s3265_s23 + $0x48] sm:$0xff] %vm1174_vm2, %v3635_v37  ;;  %v1026_v19 = vmul.f32 0.6931472, %v2767_v43  ;;  %2770 = vpow2.f32 %v926_v38  ;;  %v3654_v49 = vadd.f32 %v3179_v44, %v813_v54  ;;  %v1135_v4 = vld [vmem:[%s3251_s15 + $0x48] sm:$0xff]  ;;  %v2769_v12 = vpop.eup %2768  ;;  %vm850_vm14 = vcmp.ne.f32.partialorder %v3613_v9, %v3613_v9 }
 0x182   : > { %2772 = vlog2.f32 %v1033_v15  ;;  %v1037_v34 = vadd.f32 1.0, %v1036_v47  ;;  %v746_v26 = vpop.f32.mrf.mxu1  ;;  %v2296_v18 = vsub.f32 %v2264_v56, %v2280_v8  ;;  %v2194_v31 = vmul.f32 0.6931472, %v2769_v12 }
 0x183   : > { %v1032_v57 = vsel %vm3640_vm9, %v1029_v25, %v1026_v19  ;;  %v883_v44 = vand.u32 2147483647, %v3654_v49  ;;  %2774 = vlog2.f32 %v3635_v37  ;;  %v1151_v6 = vmul.f32 %v1135_v4, %v3635_v37 }
 0x184   : > { %v1088_v59 = vadd.f32 %v1032_v57, %v832_v63  ;;  %v1038_v40 = vmul.f32 %v2765_v33, %v1037_v34  ;;  %v2318_v22 = vsel %vm1174_vm2, %v2296_v18, 0.0  ;;  %v2217_v53 = vmul.f32 2.0, %v2194_v31 }
 0x185   : > { %v899_v0 = vsub.f32 0.0, %v883_v44  ;;  %v3674_v16 = vadd.f32 %v3162_v60, %v746_v26  ;;  %v2319_v39 = vadd.f32 %v2318_v22, %v2317_v3  ;;  %v3679_v14 = vadd.f32 %v1151_v6, %v3469_v48 }
 0x186   : > { %v1104_v7 = vsel %vm848_vm10, %v3531_v52, %v1088_v59  ;;  %vm3681_vm11 = vcmp.lt.f32.partialorder %v1039_v62, 0.0004427343  ;;  %v2233_v1 = vadd.f32 1.0, %v2217_v53  ;;  %v2250_v33 = vmul.f32 %v3469_v48, %v3469_v48  ;;  %v2879_v48 = vld [vmem:[%s4407_s8 + $0x1] ss:$0 sm:$0xff] }
 0x187   : > { %v2771_v10 = vpop.eup %2770  ;;  %v3676_v13 = vadd.f32 1e-06, %v1104_v7  ;;  %v928_v50 = vmul.f32 1.442695, %v899_v0  ;;  %1189 = vst.msk [vmem:[%s3170_s18 + $0x70] sm:$0xff] %vm1174_vm2, %v3674_v16  ;;  %v834_v18 = vmax.f32 %v3613_v9, 0.0  ;;  %v2282_v7 = vmul.f32 %v3635_v37, %v3635_v37 }
 0x188   : > { %v2773_v41 = vpop.eup %2772  ;;  %v1042_v52 = vadd.f32 1.0, %v2771_v10  ;;  %v1045_v55 = vmul.f32 -0.5, %v2771_v10  ;;  %v816_v60 = vpop.f32.mrf.mxu2  ;;  %v2265_v27 = vsub.f32 %v2233_v1, %v2249_v58  ;;  %1216 = vst.msk [vmem:[%s3294_s28 + $0x48] sm:$0xff] %vm1174_vm2, %v3679_v14  ;;  %v1048_v43 = vand.u32 2147483647, %v2771_v10 }
 0x189   : > { %2629 = vmatmul.msk.f32.gmra.mxu3 %vm1174_vm2, %v3597_v35  ;;  %1201 = vst.msk [vmem:[%s3265_s23 + $0x50] sm:$0xff] %vm1174_vm2, %v3676_v13  ;;  %v1035_v24 = vmul.f32 0.6931472, %v2773_v41  ;;  %2776 = vpow2.f32 %v928_v50  ;;  %v3697_v61 = vadd.f32 %v2878_v46, %v816_v60  ;;  %v2281_v35 = vmul.f32 %v3594_v30, %v3594_v30  ;;  %v2775_v23 = vpop.eup %2774 }
 0x18a   : > { %2778 = vlog2.f32 %v1042_v52  ;;  %v1046_v25 = vadd.f32 1.0, %v1045_v55  ;;  %v749_v3 = vpop.f32.mrf.mxu1  ;;  %v2196_v2 = vmul.f32 0.6931472, %v2775_v23  ;;  %v1152_v51 = vmul.f32 %v1136_v20, %v3676_v13 }
 0x18b   : > { %v1041_v28 = vsel %vm3681_vm11, %v1038_v40, %v1035_v24  ;;  %v884_v32 = vand.u32 2147483647, %v3697_v61  ;;  %v2297_v30 = vsub.f32 %v2265_v27, %v2281_v35  ;;  %2780 = vlog2.f32 %v3676_v13 }
 0x18c   : > { %v1089_v38 = vadd.f32 %v1041_v28, %v833_v21  ;;  %v1047_v15 = vmul.f32 %v2771_v10, %v1046_v25  ;;  %v2218_v19 = vmul.f32 2.0, %v2196_v2  ;;  %v3719_v34 = vadd.f32 %v2879_v48, %v749_v3 }
 0x18d   : > { %v900_v47 = vsub.f32 0.0, %v884_v32  ;;  %v2320_v63 = vsel %vm1174_vm2, %v2297_v30, 0.0  ;;  %v3724_v57 = vadd.f32 %v1152_v51, %v3510_v5  ;;  %vm3726_vm13 = vcmp.lt.f32.partialorder %v1048_v43, 0.0004427343 }
 0x18e   : > { %v1105_v54 = vsel %vm849_vm12, %v3572_v29, %v1089_v38  ;;  %v2321_v4 = vadd.f32 %v2320_v63, %v2319_v39  ;;  %v2234_v59 = vadd.f32 1.0, %v2218_v19  ;;  %1190 = vst.msk [vmem:[%s3170_s18 + $0x78] sm:$0xff] %vm1174_vm2, %v3719_v34  ;;  %v2251_v39 = vmul.f32 %v3510_v5, %v3510_v5  ;;  %v1138_v5 = vld [vmem:[%s3251_s15 + $0x60] sm:$0xff] }
 0x18f   : > { %v2777_v56 = vpop.eup %2776  ;;  %v3721_v8 = vadd.f32 1e-06, %v1105_v54  ;;  %v930_v12 = vmul.f32 1.442695, %v900_v47  ;;  %1217 = vst.msk [vmem:[%s3294_s28 + $0x50] sm:$0xff] %vm1174_vm2, %v3724_v57  ;;  %v835_v43 = vmax.f32 %v3654_v49, 0.0  ;;  %v2283_v2 = vmul.f32 %v3676_v13, %v3676_v13 }
 0x190   : > { %v2779_v29 = vpop.eup %2778  ;;  %v1051_v58 = vadd.f32 1.0, %v2777_v56  ;;  %v1054_v26 = vmul.f32 -0.5, %v2777_v56  ;;  %v819_v62 = vpop.f32.mrf.mxu2  ;;  %v2266_v6 = vsub.f32 %v2234_v59, %v2250_v33  ;;  %v1057_v41 = vand.u32 2147483647, %v2777_v56 }
 0x191   : > { %2630 = vmatmul.msk.f32.gmra.mxu3 %vm1174_vm2, %v3638_v11  ;;  %1202 = vst.msk [vmem:[%s3265_s23 + $0x58] sm:$0xff] %vm1174_vm2, %v3721_v8  ;;  %v1044_v31 = vmul.f32 0.6931472, %v2779_v29  ;;  %2782 = vpow2.f32 %v930_v12  ;;  %v3739_v40 = vadd.f32 %v2878_v46, %v819_v62  ;;  %v1137_v11 = vld [vmem:[%s3251_s15 + $0x58] sm:$0xff]  ;;  %v2781_v22 = vpop.eup %2780  ;;  %vm851_vm0 = vcmp.ne.f32.partialorder %v3654_v49, %v3654_v49  ;;  %v1139_v12 = vld [vmem:[%s3251_s15 + $0x68] sm:$0xff] }
 0x192   : > { %2784 = vlog2.f32 %v1051_v58  ;;  %v1055_v0 = vadd.f32 1.0, %v1054_v26  ;;  %v2298_v17 = vsub.f32 %v2266_v6, %v2282_v7  ;;  %v2198_v52 = vmul.f32 0.6931472, %v2781_v22 }
 0x193   : > { %v1050_v53 = vsel %vm3726_vm13, %v1047_v15, %v1044_v31  ;;  %v885_v10 = vand.u32 2147483647, %v3739_v40  ;;  %2786 = vlog2.f32 %v3721_v8  ;;  %v1153_v55 = vmul.f32 %v1137_v11, %v3721_v8 }
 0x194   : > { %v1090_v50 = vadd.f32 %v1050_v53, %v834_v18  ;;  %v1056_v60 = vmul.f32 %v2777_v56, %v1055_v0  ;;  %v2322_v21 = vsel %vm1174_vm2, %v2298_v17, 0.0  ;;  %v2219_v24 = vmul.f32 2.0, %v2198_v52 }
 0x195   : > { %v901_v37 = vsub.f32 0.0, %v885_v10  ;;  %v2323_v27 = vadd.f32 %v2322_v21, %v2321_v4  ;;  %v3762_v20 = vadd.f32 %v1153_v55, %v3551_v36  ;;  %vm3764_vm15 = vcmp.lt.f32.partialorder %v1057_v41, 0.0004427343 }
 0x196   : > { %v1106_v1 = vsel %vm850_vm14, %v3613_v9, %v1090_v50  ;;  %v2235_v33 = vadd.f32 1.0, %v2219_v24  ;;  %v2252_v26 = vmul.f32 %v3551_v36, %v3551_v36  ;;  %v836_v7 = vmax.f32 %v3697_v61, 0.0 }
 0x197   : > { %v2783_v46 = vpop.eup %2782  ;;  %v3759_v25 = vadd.f32 1e-06, %v1106_v1  ;;  %v932_v35 = vmul.f32 1.442695, %v901_v37  ;;  %1218 = vst.msk [vmem:[%s3294_s28 + $0x58] sm:$0xff] %vm1174_vm2, %v3762_v20  ;;  %v2284_v22 = vmul.f32 %v3721_v8, %v3721_v8  ;;  %vm852_vm4 = vcmp.ne.f32.partialorder %v3697_v61, %v3697_v61  ;;  %v1140_v8 = vld [vmem:[%s3251_s15 + $0x70] sm:$0xff] }
 0x198   : > { %v2785_v23 = vpop.eup %2784  ;;  %v1060_v9 = vadd.f32 1.0, %v2783_v46  ;;  %v1063_v32 = vmul.f32 -0.5, %v2783_v46  ;;  %v2267_v30 = vsub.f32 %v2235_v33, %v2251_v39  ;;  %v1066_v63 = vand.u32 2147483647, %v2783_v46 }
 0x199   : > { %2631 = vmatmul.msk.f32.gmra.mxu3 %vm1174_vm2, %v3679_v14  ;;  %1203 = vst.msk [vmem:[%s3265_s23 + $0x60] sm:$0xff] %vm1174_vm2, %v3759_v25  ;;  %v1053_v3 = vmul.f32 0.6931472, %v2785_v23  ;;  %2788 = vpow2.f32 %v932_v35  ;;  %v1154_v38 = vmul.f32 %v1138_v5, %v3759_v25  ;;  %v2787_v14 = vpop.eup %2786  ;;  %v837_v35 = vmax.f32 %v3739_v40, 0.0 }
 0x19a   : > { %2790 = vlog2.f32 %v1060_v9  ;;  %v1064_v47 = vadd.f32 1.0, %v1063_v32  ;;  %v2299_v19 = vsub.f32 %v2267_v30, %v2283_v2  ;;  %v2200_v48 = vmul.f32 0.6931472, %v2787_v14 }
 0x19b   : > { %v1059_v15 = vsel %vm3764_vm15, %v1056_v60, %v1053_v3  ;;  %v3783_v51 = vadd.f32 %v1154_v38, %v3592_v45  ;;  %2792 = vlog2.f32 %v3759_v25  ;;  %vm3798_vm3 = vcmp.lt.f32.partialorder %v1066_v63, 0.0004427343 }
 0x19c   : > { %v1091_v54 = vadd.f32 %v1059_v15, %v835_v43  ;;  %v2324_v56 = vsel %vm1174_vm2, %v2299_v19, 0.0  ;;  %v2220_v4 = vmul.f32 2.0, %v2200_v48  ;;  %v1065_v58 = vmul.f32 %v2783_v46, %v1064_v47  ;;  %v1141_v43 = vld [vmem:[%s3251_s15 + $0x78] sm:$0xff] }
 0x19d   : > { %1219 = vst.msk [vmem:[%s3294_s28 + $0x60] sm:$0xff] %vm1174_vm2, %v3783_v51  ;;  %v2325_v59 = vadd.f32 %v2324_v56, %v2323_v27  ;;  %vm853_vm6 = vcmp.ne.f32.partialorder %v3739_v40, %v3739_v40  ;;  %v2253_v14 = vmul.f32 %v3592_v45, %v3592_v45  ;;  %v2285_v45 = vmul.f32 %v3759_v25, %v3759_v25 }
 0x19e   : > { %v1107_v13 = vsel %vm851_vm0, %v3654_v49, %v1091_v54  ;;  %v2236_v49 = vadd.f32 1.0, %v2220_v4 }
 0x19f   : > { %v2789_v29 = vpop.eup %2788  ;;  %v3794_v44 = vadd.f32 1e-06, %v1107_v13 }
 0x1a0   : > { %v2791_v62 = vpop.eup %2790  ;;  %v1069_v31 = vadd.f32 1.0, %v2789_v29  ;;  %v1072_v0 = vmul.f32 -0.5, %v2789_v29  ;;  %v2268_v11 = vsub.f32 %v2236_v49, %v2252_v26  ;;  %v1075_v41 = vand.u32 2147483647, %v2789_v29 }
 0x1a1   : > { %2632 = vmatmul.msk.f32.gmra.mxu3 %vm1174_vm2, %v3724_v57  ;;  %1204 = vst.msk [vmem:[%s3265_s23 + $0x68] sm:$0xff] %vm1174_vm2, %v3794_v44  ;;  %v1062_v6 = vmul.f32 0.6931472, %v2791_v62  ;;  %2794 = vlog2.f32 %v3794_v44  ;;  %v1155_v36 = vmul.f32 %v1139_v12, %v3794_v44  ;;  %v2793_v53 = vpop.eup %2792 }
 0x1a2   : > { %2796 = vlog2.f32 %v1069_v31  ;;  %v1073_v10 = vadd.f32 1.0, %v1072_v0  ;;  %v2300_v17 = vsub.f32 %v2268_v11, %v2284_v22  ;;  %v2202_v37 = vmul.f32 0.6931472, %v2793_v53 }
 0x1a3   : > { %v1068_v57 = vsel %vm3798_vm3, %v1065_v58, %v1062_v6  ;;  %v1171_v39 = vadd.f32 %v1155_v36, %v3633_v42  ;;  %vm1076_vm5 = vcmp.lt.f32.partialorder %v1075_v41, 0.0004427343  ;;  %v2286_v58 = vmul.f32 %v3794_v44, %v3794_v44  ;;  %v3865_v41 = vld [vmem:[%s4407_s8 + $0x3] ss:$0 sm:$0xff] }
 0x1a4   : > { %v1092_v50 = vadd.f32 %v1068_v57, %v836_v7  ;;  %v2326_v55 = vsel %vm1174_vm2, %v2300_v17, 0.0  ;;  %v1074_v21 = vmul.f32 %v2789_v29, %v1073_v10  ;;  %v2221_v23 = vmul.f32 2.0, %v2202_v37 }
 0x1a5   : > { %1220 = vst.msk [vmem:[%s3294_s28 + $0x68] sm:$0xff] %vm1174_vm2, %v1171_v39  ;;  %v2327_v24 = vadd.f32 %v2326_v55, %v2325_v59 }
 0x1a6   : > { %v1108_v52 = vsel %vm852_vm4, %v3697_v61, %v1092_v50  ;;  %v2237_v38 = vadd.f32 1.0, %v2221_v23 }
 0x1a7   : > { %v2795_v1 = vpop.eup %2794  ;;  %v1124_v60 = vadd.f32 1e-06, %v1108_v52 }
 0x1a8   : > { %v2797_v5 = vpop.eup %2796  ;;  %v2204_v46 = vmul.f32 0.6931472, %v2795_v1  ;;  %v2269_v63 = vsub.f32 %v2237_v38, %v2253_v14 }
 0x1a9   : > { %2633 = vmatmul.msk.f32.gmra.mxu3 %vm1174_vm2, %v3762_v20  ;;  %1205 = vst.msk [vmem:[%s3265_s23 + $0x70] sm:$0xff] %vm1174_vm2, %v1124_v60  ;;  %v1071_v27 = vmul.f32 0.6931472, %v2797_v5  ;;  %2798 = vlog2.f32 %v1124_v60  ;;  %v1156_v61 = vmul.f32 %v1140_v8, %v1124_v60  ;;  %v2287_v59 = vmul.f32 %v1124_v60, %v1124_v60 }
 0x1aa   : > { %v2222_v3 = vmul.f32 2.0, %v2204_v46  ;;  %v2301_v12 = vsub.f32 %v2269_v63, %v2285_v45  ;;  %v3892_v45 = vld [vmem:[%s4407_s8 + $0x5] sm:$0x1] }
 0x1ab   : > { %v1077_v28 = vsel %vm1076_vm5, %v1074_v21, %v1071_v27  ;;  %v1172_v32 = vadd.f32 %v1156_v61, %v3674_v16 }
 0x1ac   : > { %v1329_v9 = vpop.f32.mrf.mxu3  ;;  %v1093_v33 = vadd.f32 %v1077_v28, %v837_v35  ;;  %v2238_v15 = vadd.f32 1.0, %v2222_v3  ;;  %v2328_v31 = vsel %vm1174_vm2, %v2301_v12, 0.0 }
 0x1ad   : > { %1221 = vst.msk [vmem:[%s3294_s28 + $0x70] sm:$0xff] %vm1174_vm2, %v1172_v32  ;;  %v2329_v36 = vadd.f32 %v2328_v31, %v2327_v24 }
 0x1ae   : > { %v1109_v20 = vsel %vm853_vm6, %v3739_v40, %v1093_v33  ;;  %v2254_v40 = vmul.f32 %v3633_v42, %v3633_v42 }
 0x1af   : > { %v2799_v30 = vpop.eup %2798  ;;  %v1125_v2 = vadd.f32 1e-06, %v1109_v20 }
 0x1b0   : > { %v2206_v47 = vmul.f32 0.6931472, %v2799_v30  ;;  %v2270_v56 = vsub.f32 %v2238_v15, %v2254_v40 }
 0x1b1   : > { %2634 = vmatmul.msk.f32.gmra.mxu3 %vm1174_vm2, %v3783_v51  ;;  %1206 = vst.msk [vmem:[%s3265_s23 + $0x78] sm:$0xff] %vm1174_vm2, %v1125_v2  ;;  %2800 = vlog2.f32 %v1125_v2  ;;  %v1157_v54 = vmul.f32 %v1141_v43, %v1125_v2  ;;  %v2255_v51 = vmul.f32 %v3674_v16, %v3674_v16  ;;  %v2256_v16 = vmul.f32 %v3719_v34, %v3719_v34  ;;  %v498_v43 = vld [vmem:[%s4407_s8 + $0x6] sm:$0x1] }
 0x1b2   : > { %v2223_v19 = vmul.f32 2.0, %v2206_v47  ;;  %v2302_v62 = vsub.f32 %v2270_v56, %v2286_v58  ;;  %v2288_v44 = vmul.f32 %v1125_v2, %v1125_v2  ;;  %v1612_v14 = vand.u32 2147483647, %v498_v43 }
 0x1b3   : > { %v1173_v13 = vadd.f32 %v1157_v54, %v3719_v34  ;;  %vm1610_vm7 = vcmp.ne.f32.partialorder %v498_v43, %v498_v43 }
 0x1b4   : > { %v1332_v48 = vpop.f32.mrf.mxu3  ;;  %v2239_v4 = vadd.f32 1.0, %v2223_v19  ;;  %v2330_v6 = vsel %vm1174_vm2, %v2302_v62, 0.0  ;;  %v1613_v15 = vsub.f32 0.0, %v1612_v14 }
 0x1b5   : > { %1222 = vst.msk [vmem:[%s3294_s28 + $0x78] sm:$0xff] %vm1174_vm2, %v1173_v13  ;;  %v2331_v22 = vadd.f32 %v2330_v6, %v2329_v36 }
 0x1b6   : > { %v2271_v29 = vsub.f32 %v2239_v4, %v2255_v51  ;;  %v1614_v40 = vmul.f32 1.442695, %v1613_v15  ;;  %v3896_v4 = vsub.f32 0.0, %v3892_v45 }
 0x1b7   : > { %v2801_v42 = vpop.eup %2800 }
 0x1b8   : > { %v2208_v26 = vmul.f32 0.6931472, %v2801_v42  ;;  %v2303_v25 = vsub.f32 %v2271_v29, %v2287_v59  ;;  %2802 = vpow2.f32 %v1614_v40  ;;  %v1635_v58 = vand.u32 2147483647, %v3896_v4 }
 0x1b9   : > { %2635 = vmatmul.msk.f32.gmra.mxu3 %vm1174_vm2, %v1171_v39  ;;  %vm1633_vm9 = vcmp.ne.f32.partialorder %v3896_v4, %v3896_v4 }
 0x1ba   : > { %v2224_v18 = vmul.f32 2.0, %v2208_v26  ;;  %v2332_v11 = vsel %vm1174_vm2, %v2303_v25, 0.0  ;;  %v1636_v59 = vsub.f32 0.0, %v1635_v58 }
 0x1bb   : > { %v2333_v57 = vadd.f32 %v2332_v11, %v2331_v22 }
 0x1bc   : > { %v1335_v0 = vpop.f32.mrf.mxu3  ;;  %v2240_v49 = vadd.f32 1.0, %v2224_v18 }
 0x1be   : > { %v2272_v7 = vsub.f32 %v2240_v49, %v2256_v16  ;;  %v2803_v56 = vpop.eup %2802  ;;  %v1637_v16 = vmul.f32 1.442695, %v1636_v59 }
 0x1bf   : > { %v1616_v12 = vadd.f32 1.0, %v2803_v56  ;;  %v1619_v26 = vmul.f32 -0.5, %v2803_v56 }
 0x1c0   : > { %v2304_v53 = vsub.f32 %v2272_v7, %v2288_v44  ;;  %v1609_v44 = vmax.f32 %v498_v43, 0.0 }
 0x1c1   : > { %2636 = vmatmul.msk.f32.gmra.mxu3 %vm1174_vm2, %v1172_v32  ;;  %2804 = vlog2.f32 %v1616_v12  ;;  %v1620_v25 = vadd.f32 1.0, %v1619_v26 }
 0x1c2   : > { %v2334_v10 = vsel %vm1174_vm2, %v2304_v53, 0.0  ;;  %2806 = vpow2.f32 %v1637_v16  ;;  %v2882_v16 = vld [vmem:[%s3022_s27 + $0x10] sm:$0xff] }
 0x1c3   : > { %v2335_v50 = vadd.f32 %v2334_v10, %v2333_v57  ;;  %v1621_v36 = vmul.f32 %v2803_v56, %v1620_v25 }
 0x1c4   : > { %v1338_v39 = vpop.f32.mrf.mxu3 }
 0x1c5   : > { %1556 = vmatpush.msrb.mxu0 %v1338_v39  ;;  %2336 = vadd.xlane.f32.xlu0 %v2335_v50 }
 0x1c7   : > { %1557 = vmatpush.msrb.mxu0 %v1335_v0  ;;  %v2805_v31 = vpop.eup %2804  ;;  %v1622_v0 = vand.u32 2147483647, %v2803_v56 }
 0x1c8   : > { %v1618_v6 = vmul.f32 0.6931472, %v2805_v31  ;;  %v2807_v57 = vpop.eup %2806 }
 0x1c9   : > { %2637 = vmatmul.msk.f32.gmra.mxu3 %vm1174_vm2, %v1173_v13  ;;  %1558 = vmatpush.msrb.mxu0 %v1332_v48  ;;  %vm1623_vm2 = vcmp.lt.f32.partialorder %v1622_v0, 0.0004427343  ;;  %v1639_v39 = vadd.f32 1.0, %v2807_v57 }
 0x1ca   : > { %v1624_v22 = vsel %vm1623_vm2, %v1621_v36, %v1618_v6 }
 0x1cb   : > { %1559 = vmatpush.msrb.mxu0 %v1329_v9  ;;  %v1625_v10 = vadd.f32 %v1624_v22, %v1609_v44  ;;  %2808 = vlog2.f32 %v1639_v39 }
 0x1cc   : > { %v3860_v34 = vpop.f32.mrf.mxu3 }
 0x1d4   : > { %v1431_v17 = vpop.f32.mrf.mxu3 }
 0x1d5   : > { %v1432_v52 = vadd.f32 %v3865_v41, %v1431_v17  ;;  %v1626_v17 = vsel %vm1610_vm7, %v498_v43, %v1625_v10 }
 0x1d7   : > { %v1479_v37 = vmax.f32 %v1432_v52, 0.0 }
 0x1d9   : > { %2638 = vmatmul.msk.f32.vlgmr.msrb.gmra.mxu0 %vm504_vm1, %v1479_v37 }
 0x1dc   : > { %v1434_v8 = vpop.f32.mrf.mxu3 }
 0x1dd   : > { %v1435_v55 = vadd.f32 %v3865_v41, %v1434_v8  ;;  %v1627_v8 = vadd.f32 0.0001, %v1626_v17 }
 0x1df   : > { %v1480_v1 = vmax.f32 %v1435_v55, 0.0  ;;  %v1642_v55 = vmul.f32 -0.5, %v2807_v57  ;;  %2810 = vrcp.f32 %v1627_v8 }
 0x1e0   : > { %2812 = vlog2.f32 %v1627_v8 }
 0x1e1   : > { %2639 = vmatmul.msk.f32.gmra.mxu0 %vm504_vm1, %v1480_v1 }
 0x1e4   : > { %v1437_v60 = vpop.f32.mrf.mxu3 }
 0x1e5   : > { %v1438_v21 = vadd.f32 %v3865_v41, %v1437_v60  ;;  %v1643_v60 = vadd.f32 1.0, %v1642_v55 }
 0x1e7   : > { %v1481_v24 = vmax.f32 %v1438_v21, 0.0 }
 0x1e9   : > { %2640 = vmatmul.msk.f32.gmra.mxu0 %vm504_vm1, %v1481_v24  ;;  %v2809_v24 = vpop.eup %2808 }
 0x1ec   : > { %v1440_v5 = vpop.f32.mrf.mxu3 }
 0x1ed   : > { %v1441_v46 = vadd.f32 %v3865_v41, %v1440_v5  ;;  %v1645_v5 = vand.u32 2147483647, %v2807_v57 }
 0x1ef   : > { %v1482_v27 = vmax.f32 %v1441_v46, 0.0  ;;  %vm1646_vm8 = vcmp.lt.f32.partialorder %v1645_v5, 0.0004427343 }
 0x1f1   : > { %2641 = vmatmul.msk.f32.gmra.mxu0 %vm504_vm1, %v1482_v27  ;;  %v1641_v27 = vmul.f32 0.6931472, %v2809_v24 }
 0x1f4   : > { %v1443_v61 = vpop.f32.mrf.mxu3 }
 0x1f5   : > { %v1444_v35 = vadd.f32 %v3865_v41, %v1443_v61  ;;  %v1644_v61 = vmul.f32 %v2807_v57, %v1643_v60 }
 0x1f7   : > { %v1483_v23 = vmax.f32 %v1444_v35, 0.0  ;;  %v2811_v35 = vpop.eup %2810 }
 0x1f9   : > { %2642 = vmatmul.msk.f32.gmra.mxu0 %vm504_vm1, %v1483_v23  ;;  %v1632_v23 = vmax.f32 %v3896_v4, 0.0 }
 0x1fc   : > { %v1446_v28 = vpop.f32.mrf.mxu3 }
 0x1fd   : > { %v1447_v9 = vadd.f32 %v3865_v41, %v1446_v28 }
 0x1ff   : > { %v1484_v32 = vmax.f32 %v1447_v9, 0.0  ;;  %v1647_v9 = vsel %vm1646_vm8, %v1644_v61, %v1641_v27 }
 0x201   : > { %2643 = vmatmul.msk.f32.gmra.mxu0 %vm504_vm1, %v1484_v32  ;;  %v3910_v32 = vperm.slane %v2811_v35, 0 }
 0x204   : > { %v1449_v33 = vpop.f32.mrf.mxu3 }
 0x205   : > { %v1450_v3 = vadd.f32 %v3865_v41, %v1449_v33 }
 0x207   : > { %v1485_v20 = vmax.f32 %v1450_v3, 0.0  ;;  %v2813_v3 = vpop.eup %2812 }
 0x208   : > { %v1630_v43 = vmul.f32 0.6931472, %v2813_v3 }
 0x209   : > { %2644 = vmatmul.msk.f32.gmra.mxu0 %vm504_vm1, %v1485_v20 }
 0x20a   : > { %v1652_v15 = vsub.f32 -0.9189385, %v1630_v43 }
 0x20c   : > { %v1452_v38 = vpop.f32.mrf.mxu3 }
 0x20d   : > { %v1453_v30 = vadd.f32 %v3865_v41, %v1452_v38  ;;  %v1648_v38 = vadd.f32 %v1647_v9, %v1632_v23 }
 0x20f   : > { %v1486_v2 = vmax.f32 %v1453_v30, 0.0  ;;  %v2880_v30 = vld [vmem:[%s3022_s27] sm:$0xff]  ;;  %v1649_v14 = vsel %vm1633_vm9, %v3896_v4, %v1648_v38 }
 0x211   : > { %2645 = vmatmul.msk.f32.gmra.mxu0 %vm504_vm1, %v1486_v2  ;;  %v1735_v2 = vmul.f32 %v2880_v30, %v3910_v32 }
 0x214   : > { %v1455_v47 = vpop.f32.mrf.mxu3 }
 0x215   : > { %v1456_v54 = vadd.f32 %v3865_v41, %v1455_v47  ;;  %v1751_v47 = vmul.f32 %v1735_v2, %v1735_v2  ;;  %v2884_v2 = vld [vmem:[%s3022_s27 + $0x20] sm:$0xff] }
 0x217   : > { %v1487_v63 = vmax.f32 %v1456_v54, 0.0  ;;  %v3920_v54 = vperm.slane %v3860_v34, 0 }
 0x219   : > { %2646 = vmatmul.msk.f32.gmra.mxu0 %vm504_vm1, %v1487_v63  ;;  %v1650_v63 = vsub.f32 0.0, %v1649_v14  ;;  %v1739_v14 = vmul.f32 %v2884_v2, %v3910_v32 }
 0x21b   : > { %v1651_v12 = vsub.f32 %v1650_v63, %v3892_v45  ;;  %v3930_v34 = vperm.slane %v1650_v63, 0 }
 0x21c   : > { %v1458_v19 = vpop.f32.mrf.mxu3 }
 0x21d   : > { %v1459_v48 = vadd.f32 %v3865_v41, %v1458_v19  ;;  %v3923_v19 = vperm.slane %v1652_v15, 0 }
 0x21f   : > { %v1488_v13 = vmax.f32 %v1459_v48, 0.0  ;;  %v1767_v48 = vmul.f32 0.5, %v1751_v47 }
 0x221   : > { %2647 = vmatmul.msk.f32.gmra.mxu0 %vm504_vm1, %v1488_v13  ;;  %v2881_v13 = vld [vmem:[%s3022_s27 + $0x8] sm:$0xff] }
 0x222   : > { %v1736_v56 = vmul.f32 %v2881_v13, %v3910_v32 }
 0x224   : > { %v1461_v51 = vpop.f32.mrf.mxu3  ;;  %v1752_v58 = vmul.f32 %v1736_v56, %v1736_v56  ;;  %v2885_v56 = vld [vmem:[%s3022_s27 + $0x28] sm:$0xff] }
 0x225   : > { %v1462_v29 = vadd.f32 %v3865_v41, %v1461_v51 }
 0x226   : > { %v1768_v31 = vmul.f32 0.5, %v1752_v58  ;;  %v1755_v58 = vmul.f32 %v1739_v14, %v1739_v14 }
 0x227   : > { %v1489_v42 = vmax.f32 %v1462_v29, 0.0  ;;  %v1783_v29 = vsub.f32 %v3923_v19, %v1767_v48 }
 0x229   : > { %2648 = vmatmul.msk.f32.gmra.mxu0 %vm504_vm1, %v1489_v42  ;;  %v3936_v25 = vadd.f32 %v3930_v34, %v1783_v29 }
 0x22c   : > { %v1464_v62 = vpop.f32.mrf.mxu3 }
 0x22d   : > { %v1465_v18 = vadd.f32 %v3865_v41, %v1464_v62  ;;  %v3932_v62 = vperm.slane %v1651_v12, 0  ;;  %v3983_v12 = vld [vmem:[%s3022_s27 + $0x30] sm:$0xff] }
 0x22f   : > { %v1490_v49 = vmax.f32 %v1465_v18, 0.0 }
 0x231   : > { %2649 = vmatmul.msk.f32.gmra.mxu0 %vm504_vm1, %v1490_v49  ;;  %v1737_v49 = vmul.f32 %v2882_v16, %v3910_v32 }
 0x234   : > { %v1467_v7 = vpop.f32.mrf.mxu3 }
 0x235   : > { %v1468_v11 = vadd.f32 %v3865_v41, %v1467_v7  ;;  %v1784_v7 = vsub.f32 %v3923_v19, %v1768_v31 }
 0x237   : > { %v1491_v53 = vmax.f32 %v1468_v11, 0.0 }
 0x239   : > { %2650 = vmatmul.msk.f32.gmra.mxu0 %vm504_vm1, %v1491_v53  ;;  %v1753_v53 = vmul.f32 %v1737_v49, %v1737_v49 }
 0x23c   : > { %v1470_v50 = vpop.f32.mrf.mxu3 }
 0x23d   : > { %v1471_v52 = vadd.f32 %v3865_v41, %v1470_v50  ;;  %v2883_v50 = vld [vmem:[%s3022_s27 + $0x18] sm:$0xff] }
 0x23e   : > { %v1738_v17 = vmul.f32 %v2883_v50, %v3910_v32 }
 0x23f   : > { %v1492_v37 = vmax.f32 %v1471_v52, 0.0  ;;  %v3955_v52 = vadd.f32 %v3930_v34, %v1784_v7 }
 0x240   : > { %v1754_v5 = vmul.f32 %v1738_v17, %v1738_v17 }
 0x241   : > { %2651 = vmatmul.msk.f32.gmra.mxu0 %vm504_vm1, %v1492_v37 }
 0x244   : > { %v1473_v1 = vpop.f32.mrf.mxu3 }
 0x245   : > { %v1474_v21 = vadd.f32 %v3865_v41, %v1473_v1  ;;  %v1769_v1 = vmul.f32 0.5, %v1753_v53 }
 0x247   : > { %v1493_v46 = vmax.f32 %v1474_v21, 0.0  ;;  %v1785_v35 = vsub.f32 %v3923_v19, %v1769_v1 }
 0x249   : > { %2652 = vmatmul.msk.f32.gmra.mxu0 %vm504_vm1, %v1493_v46 }
 0x24c   : > { %v1476_v28 = vpop.f32.mrf.mxu3 }
 0x24d   : > { %v1477_v33 = vadd.f32 %v3865_v41, %v1476_v28 }
 0x24f   : > { %v1494_v20 = vmax.f32 %v1477_v33, 0.0  ;;  %v1770_v33 = vmul.f32 0.5, %v1754_v5 }
 0x251   : > { %2653 = vmatmul.msk.f32.gmra.mxu0 %vm504_vm1, %v1494_v20  ;;  %v1786_v48 = vsub.f32 %v3923_v19, %v1770_v33  ;;  %v4011_v33 = vld [vmem:[%s3022_s27 + $0x38] sm:$0xff] }
 0x253   : > { %v3993_v31 = vadd.f32 %v3930_v34, %v1786_v48 }
 0x256   : > { %v1561_v41 = vpop.f32.mrf.mxu0 }
 0x257   : > { %v1562_v40 = vadd.f32 %v1561_v41, %v3920_v54 }
 0x259   : > { %v1653_v51 = vsub.f32 %v2880_v30, %v1562_v40  ;;  %v3971_v30 = vadd.f32 %v3930_v34, %v1785_v35 }
 0x25b   : > { %v1670_v4 = vmul.f32 %v3910_v32, %v1653_v51  ;;  %v1740_v51 = vmul.f32 %v2885_v56, %v3910_v32 }
 0x25d   : > { %v1686_v42 = vmul.f32 %v1670_v4, %v1670_v4  ;;  %v1741_v4 = vmul.f32 %v3983_v12, %v3910_v32  ;;  %v1756_v49 = vmul.f32 %v1740_v51, %v1740_v51 }
 0x25e   : > { %v1564_v26 = vpop.f32.mrf.mxu0 }
 0x25f   : > { %v1702_v59 = vmul.f32 0.5, %v1686_v42  ;;  %v1565_v18 = vadd.f32 %v1564_v26, %v3920_v54 }
 0x261   : > { %v1719_v45 = vsub.f32 %v3923_v19, %v1702_v59  ;;  %v1654_v0 = vsub.f32 %v2881_v13, %v1565_v18 }
 0x263   : > { %v3942_v6 = vadd.f32 %v3932_v62, %v1719_v45  ;;  %v1671_v36 = vmul.f32 %v3910_v32, %v1654_v0 }
 0x265   : > { %v3948_v44 = vsub.f32 %v3936_v25, %v3942_v6  ;;  %v1687_v11 = vmul.f32 %v1671_v36, %v1671_v36  ;;  %v1757_v36 = vmul.f32 %v1741_v4, %v1741_v4  ;;  %v1881_v51 = vadd.f32 %v3942_v6, %v3936_v25 }
 0x266   : > { %v1567_v22 = vpop.f32.mrf.mxu0 }
 0x267   : > { %v1897_v57 = vand.u32 2147483647, %v3948_v44  ;;  %v1703_v10 = vmul.f32 0.5, %v1687_v11  ;;  %v1568_v39 = vadd.f32 %v1567_v22, %v3920_v54  ;;  %v1771_v22 = vmul.f32 0.5, %v1755_v58 }
 0x268   : > { %vm1865_vm11 = vcmp.ne.f32.partialorder %v3948_v44, %v3948_v44 }
 0x269   : > { %v1913_v37 = vsub.f32 0.0, %v1897_v57  ;;  %v1720_v8 = vsub.f32 %v3923_v19, %v1703_v10  ;;  %v1655_v55 = vsub.f32 %v2882_v16, %v1568_v39 }
 0x26b   : > { %v1929_v60 = vmul.f32 1.442695, %v1913_v37  ;;  %v3959_v21 = vadd.f32 %v3932_v62, %v1720_v8  ;;  %v1672_v24 = vmul.f32 %v3910_v32, %v1655_v55 }
 0x26d   : > { %2814 = vpow2.f32 %v1929_v60  ;;  %v3964_v46 = vsub.f32 %v3955_v52, %v3959_v21  ;;  %v1688_v27 = vmul.f32 %v1672_v24, %v1672_v24  ;;  %v1772_v60 = vmul.f32 0.5, %v1756_v49 }
 0x26e   : > { %v1570_v61 = vpop.f32.mrf.mxu0  ;;  %v1773_v24 = vmul.f32 0.5, %v1757_v36  ;;  %v1834_v58 = vmax.f32 %v3955_v52, %v3959_v21 }
 0x26f   : > { %v1898_v23 = vand.u32 2147483647, %v3964_v46  ;;  %v1571_v28 = vadd.f32 %v1570_v61, %v3920_v54  ;;  %v1704_v9 = vmul.f32 0.5, %v1688_v27  ;;  %v1787_v27 = vsub.f32 %v3923_v19, %v1771_v22 }
 0x270   : > { %vm1866_vm13 = vcmp.ne.f32.partialorder %v3964_v46, %v3964_v46 }
 0x271   : > { %v1914_v3 = vsub.f32 0.0, %v1898_v23  ;;  %v1656_v20 = vsub.f32 %v2883_v50, %v1571_v28  ;;  %v1721_v38 = vsub.f32 %v3923_v19, %v1704_v9  ;;  %v1833_v23 = vmax.f32 %v3936_v25, %v3942_v6 }
 0x273   : > { %v2815_v43 = vpop.eup %2814  ;;  %v1931_v15 = vmul.f32 1.442695, %v1914_v3  ;;  %v1673_v47 = vmul.f32 %v3910_v32, %v1656_v20  ;;  %v3977_v40 = vadd.f32 %v3932_v62, %v1721_v38  ;;  %v1742_v3 = vmul.f32 %v4011_v33, %v3910_v32 }
 0x274   : > { %v1961_v41 = vadd.f32 1.0, %v2815_v43  ;;  %v1964_v63 = vmul.f32 -0.5, %v2815_v43  ;;  %v1967_v7 = vand.u32 2147483647, %v2815_v43 }
 0x275   : > { %2816 = vpow2.f32 %v1931_v15  ;;  %v1689_v13 = vmul.f32 %v1673_v47, %v1673_v47  ;;  %v3989_v42 = vsub.f32 %v3971_v30, %v3977_v40  ;;  %v4016_v47 = vadd.f32 %v3930_v34, %v1787_v27 }
 0x276   : > { %2818 = vlog2.f32 %v1961_v41  ;;  %v1573_v29 = vpop.f32.mrf.mxu0  ;;  %v1965_v18 = vadd.f32 1.0, %v1964_v63  ;;  %vm1968_vm10 = vcmp.lt.f32.partialorder %v1967_v7, 0.0004427343  ;;  %v1788_v41 = vsub.f32 %v3923_v19, %v1772_v60 }
 0x277   : > { %v1705_v26 = vmul.f32 0.5, %v1689_v13  ;;  %v1574_v59 = vadd.f32 %v1573_v29, %v3920_v54  ;;  %v1899_v45 = vand.u32 2147483647, %v3989_v42  ;;  %v1789_v63 = vsub.f32 %v3923_v19, %v1773_v24 }
 0x278   : > { %v1966_v39 = vmul.f32 %v2815_v43, %v1965_v18  ;;  %v1758_v36 = vmul.f32 %v1742_v3, %v1742_v3  ;;  %v1882_v7 = vadd.f32 %v3959_v21, %v3955_v52  ;;  %vm1867_vm15 = vcmp.ne.f32.partialorder %v3989_v42, %v3989_v42 }
 0x279   : > { %v1722_v0 = vsub.f32 %v3923_v19, %v1705_v26  ;;  %v1657_v16 = vsub.f32 %v2884_v2, %v1574_v59  ;;  %v1915_v53 = vsub.f32 0.0, %v1899_v45 }
 0x27a   : > { %v4051_v60 = vmul.f32 0.5, %v1758_v36 }
 0x27b   : > { %v2817_v11 = vpop.eup %2816  ;;  %v3998_v57 = vadd.f32 %v3932_v62, %v1722_v0  ;;  %v1674_v17 = vmul.f32 %v3910_v32, %v1657_v16  ;;  %v1933_v55 = vmul.f32 1.442695, %v1915_v53 }
 0x27c   : > { %v2819_v10 = vpop.eup %2818  ;;  %v1970_v50 = vadd.f32 1.0, %v2817_v11  ;;  %v1973_v8 = vmul.f32 -0.5, %v2817_v11  ;;  %v1976_v2 = vand.u32 2147483647, %v2817_v11 }
 0x27d   : > { %v1963_v37 = vmul.f32 0.6931472, %v2819_v10  ;;  %v4003_v1 = vsub.f32 %v3993_v31, %v3998_v57  ;;  %v1690_v28 = vmul.f32 %v1674_v17, %v1674_v17 }
 0x27e   : > { %2820 = vlog2.f32 %v1970_v50  ;;  %v1576_v5 = vpop.f32.mrf.mxu0  ;;  %v1974_v20 = vadd.f32 1.0, %v1973_v8  ;;  %vm1977_vm12 = vcmp.lt.f32.partialorder %v1976_v2, 0.0004427343 }
 0x27f   : > { %v1969_v61 = vsel %vm1968_vm10, %v1966_v39, %v1963_v37  ;;  %2822 = vpow2.f32 %v1933_v55  ;;  %v1900_v35 = vand.u32 2147483647, %v4003_v1  ;;  %v1577_v9 = vadd.f32 %v1576_v5, %v3920_v54 }
 0x280   : > { %v2105_v43 = vadd.f32 %v1969_v61, %v1833_v23  ;;  %v1706_v14 = vmul.f32 0.5, %v1690_v28  ;;  %v1975_v59 = vmul.f32 %v2817_v11, %v1974_v20  ;;  %v4035_v11 = vadd.f32 %v3930_v34, %v1788_v41  ;;  %v4063_v20 = vld [vmem:[%s3022_s27 + $0x48] sm:$0xff] }
 0x281   : > { %v1916_v38 = vsub.f32 0.0, %v1900_v35  ;;  %v1658_v15 = vsub.f32 %v2885_v56, %v1577_v9  ;;  %v4044_v39 = vadd.f32 %v3930_v34, %v1789_v63  ;;  %v4058_v9 = vld [vmem:[%s3022_s27 + $0x40] sm:$0xff]  ;;  %vm1868_vm3 = vcmp.ne.f32.partialorder %v4003_v1, %v4003_v1 }
 0x282   : > { %v1723_v4 = vsub.f32 %v3923_v19, %v1706_v14  ;;  %v2121_v18 = vsel %vm1865_vm11, %v1881_v51, %v2105_v43  ;;  %v1743_v3 = vmul.f32 %v4058_v9, %v3910_v32  ;;  %v1835_v43 = vmax.f32 %v3971_v30, %v3977_v40 }
 0x283   : > { %v1935_v48 = vmul.f32 1.442695, %v1916_v38  ;;  %v1675_v29 = vmul.f32 %v3910_v32, %v1658_v15  ;;  %v2137_v50 = vsel %vm504_vm1, %v2121_v18, 0.0  ;;  %v1744_v38 = vmul.f32 %v4063_v20, %v3910_v32 }
 0x284   : > { %v2821_v13 = vpop.eup %2820  ;;  %v4029_v0 = vadd.f32 %v3932_v62, %v1723_v4 }
 0x285   : > { %v2823_v56 = vpop.eup %2822  ;;  %v1972_v26 = vmul.f32 0.6931472, %v2821_v13  ;;  %2824 = vpow2.f32 %v1935_v48  ;;  %v1691_v6 = vmul.f32 %v1675_v29, %v1675_v29  ;;  %v1883_v48 = vadd.f32 %v3977_v40, %v3971_v30  ;;  %v4084_v30 = vld [vmem:[%s3022_s27 + $0x58] sm:$0xff] }
 0x286   : > { %v1979_v45 = vadd.f32 1.0, %v2823_v56  ;;  %v1579_v44 = vpop.f32.mrf.mxu0  ;;  %v1982_v25 = vmul.f32 -0.5, %v2823_v56  ;;  %v4041_v53 = vsub.f32 %v4016_v47, %v4029_v0  ;;  %v1985_v5 = vand.u32 2147483647, %v2823_v56 }
 0x287   : > { %v1978_v16 = vsel %vm1977_vm12, %v1975_v59, %v1972_v26  ;;  %v1580_v49 = vadd.f32 %v1579_v44, %v3920_v54  ;;  %v1707_v10 = vmul.f32 0.5, %v1691_v6  ;;  %v4088_v40 = vmul.f32 %v4084_v30, %v3910_v32 }
 0x288   : > { %v2106_v22 = vadd.f32 %v1978_v16, %v1834_v58  ;;  %2826 = vlog2.f32 %v1979_v45  ;;  %v1983_v8 = vadd.f32 1.0, %v1982_v25  ;;  %v1901_v46 = vand.u32 2147483647, %v4041_v53  ;;  %v4079_v45 = vld [vmem:[%s3022_s27 + $0x50] sm:$0xff] }
 0x289   : > { %v1659_v52 = vsub.f32 %v3983_v12, %v1580_v49  ;;  %v1724_v55 = vsub.f32 %v3923_v19, %v1707_v10  ;;  %vm1986_vm14 = vcmp.lt.f32.partialorder %v1985_v5, 0.0004427343  ;;  %v1745_v44 = vmul.f32 %v4079_v45, %v3910_v32 }
 0x28a   : > { %v2122_v17 = vsel %vm1866_vm13, %v1882_v7, %v2106_v22  ;;  %v1917_v35 = vsub.f32 0.0, %v1901_v46  ;;  %v1984_v15 = vmul.f32 %v2823_v56, %v1983_v8  ;;  %v1790_v46 = vsub.f32 %v3923_v19, %v4051_v60 }
 0x28b   : > { %v2825_v21 = vpop.eup %2824  ;;  %v2138_v37 = vsel %vm504_vm1, %v2122_v17, 0.0  ;;  %v4054_v23 = vadd.f32 %v3932_v62, %v1724_v55  ;;  %v1676_v12 = vmul.f32 %v3910_v32, %v1659_v52  ;;  %v1759_v55 = vmul.f32 %v1743_v3, %v1743_v3  ;;  %v4112_v3 = vld [vmem:[%s3022_s27 + $0x60] sm:$0xff] }
 0x28c   : > { %v2139_v24 = vadd.f32 %v2138_v37, %v2137_v50  ;;  %v1988_v27 = vadd.f32 1.0, %v2825_v21  ;;  %v1991_v61 = vmul.f32 -0.5, %v2825_v21  ;;  %v1937_v41 = vmul.f32 1.442695, %v1917_v35 }
 0x28d   : > { %v4071_v63 = vsub.f32 %v4035_v11, %v4054_v23  ;;  %v1692_v13 = vmul.f32 %v1676_v12, %v1676_v12  ;;  %v1994_v56 = vand.u32 2147483647, %v2825_v21  ;;  %vm1869_vm5 = vcmp.ne.f32.partialorder %v4041_v53, %v4041_v53 }
 0x28e   : > { %v2827_v28 = vpop.eup %2826  ;;  %2828 = vlog2.f32 %v1988_v27  ;;  %v1582_v2 = vpop.f32.mrf.mxu0  ;;  %v1992_v29 = vadd.f32 1.0, %v1991_v61  ;;  %v1884_v27 = vadd.f32 %v3998_v57, %v3993_v31 }
 0x28f   : > { %v1981_v14 = vmul.f32 0.6931472, %v2827_v28  ;;  %v1583_v51 = vadd.f32 %v1582_v2, %v3920_v54  ;;  %2830 = vpow2.f32 %v1937_v41  ;;  %v1902_v58 = vand.u32 2147483647, %v4071_v63  ;;  %v4125_v41 = vld [vmem:[%s3022_s27 + $0x68] sm:$0xff] }
 0x290   : > { %v1708_v59 = vmul.f32 0.5, %v1692_v13  ;;  %v1993_v10 = vmul.f32 %v2825_v21, %v1992_v29  ;;  %vm1995_vm0 = vcmp.lt.f32.partialorder %v1994_v56, 0.0004427343  ;;  %v1760_v28 = vmul.f32 %v1744_v38, %v1744_v38 }
 0x291   : > { %v1987_v4 = vsel %vm1986_vm14, %v1984_v15, %v1981_v14  ;;  %v1660_v18 = vsub.f32 %v4011_v33, %v1583_v51  ;;  %v1918_v16 = vsub.f32 0.0, %v1902_v58  ;;  %v1836_v33 = vmax.f32 %v3993_v31, %v3998_v57 }
 0x292   : > { %v2107_v26 = vadd.f32 %v1987_v4, %v1835_v43  ;;  %v1725_v49 = vsub.f32 %v3923_v19, %v1708_v59  ;;  %v4116_v31 = vmul.f32 %v4112_v3, %v3910_v32  ;;  %v4119_v43 = vadd.f32 %v3930_v34, %v1790_v46  ;;  %v4131_v4 = vld [vmem:[%s3022_s27 + $0x70] sm:$0xff] }
 0x293   : > { %v1677_v36 = vmul.f32 %v3910_v32, %v1660_v18  ;;  %v1939_v50 = vmul.f32 1.442695, %v1918_v16  ;;  %v1775_v15 = vmul.f32 0.5, %v1759_v55  ;;  %v1748_v38 = vmul.f32 %v4125_v41, %v3910_v32 }
 0x294   : > { %v2829_v25 = vpop.eup %2828  ;;  %v2123_v6 = vsel %vm1867_vm15, %v1883_v48, %v2107_v26  ;;  %v4098_v52 = vadd.f32 %v3932_v62, %v1725_v49  ;;  %v4135_v29 = vmul.f32 %v4131_v4, %v3910_v32  ;;  %vm1870_vm2 = vcmp.ne.f32.partialorder %v4071_v63, %v4071_v63 }
 0x295   : > { %v2140_v7 = vsel %vm504_vm1, %v2123_v6, 0.0  ;;  %v1990_v22 = vmul.f32 0.6931472, %v2829_v25  ;;  %v1693_v42 = vmul.f32 %v1677_v36, %v1677_v36  ;;  %v2831_v8 = vpop.eup %2830  ;;  %2832 = vpow2.f32 %v1939_v50 }
 0x296   : > { %v2141_v17 = vadd.f32 %v2140_v7, %v2139_v24  ;;  %v1585_v37 = vpop.f32.mrf.mxu0  ;;  %v1997_v61 = vadd.f32 1.0, %v2831_v8  ;;  %v2000_v35 = vmul.f32 -0.5, %v2831_v8  ;;  %v4109_v12 = vsub.f32 %v4044_v39, %v4098_v52 }
 0x297   : > { %v1996_v5 = vsel %vm1995_vm0, %v1993_v10, %v1990_v22  ;;  %v1586_v24 = vadd.f32 %v1585_v37, %v3920_v54  ;;  %v1709_v60 = vmul.f32 0.5, %v1693_v42  ;;  %v2003_v59 = vand.u32 2147483647, %v2831_v8 }
 0x298   : > { %v2108_v21 = vadd.f32 %v1996_v5, %v1836_v33  ;;  %2834 = vlog2.f32 %v1997_v61  ;;  %v1903_v2 = vand.u32 2147483647, %v4109_v12  ;;  %v2001_v58 = vadd.f32 1.0, %v2000_v35 }
 0x299   : > { %v1726_v14 = vsub.f32 %v3923_v19, %v1709_v60  ;;  %v1661_v13 = vsub.f32 %v4058_v9, %v1586_v24  ;;  %v1776_v33 = vmul.f32 0.5, %v1760_v28  ;;  %v1761_v9 = vmul.f32 %v1745_v44, %v1745_v44 }
 0x29a   : > { %v2124_v57 = vsel %vm1868_vm3, %v1884_v27, %v2108_v21  ;;  %v1919_v26 = vsub.f32 0.0, %v1903_v2  ;;  %v1791_v22 = vsub.f32 %v3923_v19, %v1775_v15  ;;  %v1837_v10 = vmax.f32 %v4016_v47, %v4029_v0 }
 0x29b   : > { %v2142_v1 = vsel %vm504_vm1, %v2124_v57, 0.0  ;;  %v2833_v51 = vpop.eup %2832  ;;  %v4138_v56 = vadd.f32 %v3932_v62, %v1726_v14  ;;  %v1678_v25 = vmul.f32 %v3910_v32, %v1661_v13  ;;  %v2002_v42 = vmul.f32 %v2831_v8, %v2001_v58 }
 0x29c   : > { %v2143_v48 = vadd.f32 %v2142_v1, %v2141_v17  ;;  %v2006_v18 = vadd.f32 1.0, %v2833_v51  ;;  %v2009_v16 = vmul.f32 -0.5, %v2833_v51  ;;  %v1941_v49 = vmul.f32 1.442695, %v1919_v26 }
 0x29d   : > { %v4143_v36 = vsub.f32 %v4119_v43, %v4138_v56  ;;  %v1694_v50 = vmul.f32 %v1678_v25, %v1678_v25  ;;  %vm2004_vm4 = vcmp.lt.f32.partialorder %v2003_v59, 0.0004427343  ;;  %v1792_v5 = vsub.f32 %v3923_v19, %v1776_v33 }
 0x29e   : > { %v1588_v6 = vpop.f32.mrf.mxu0  ;;  %v2835_v7 = vpop.eup %2834  ;;  %2836 = vlog2.f32 %v2006_v18  ;;  %v2010_v44 = vadd.f32 1.0, %v2009_v16  ;;  %v1885_v27 = vadd.f32 %v4029_v0, %v4016_v47  ;;  %v2012_v35 = vand.u32 2147483647, %v2833_v51 }
 0x29f   : > { %v1999_v17 = vmul.f32 0.6931472, %v2835_v7  ;;  %2838 = vpow2.f32 %v1941_v49  ;;  %v1904_v37 = vand.u32 2147483647, %v4143_v36  ;;  %v1710_v46 = vmul.f32 0.5, %v1694_v50 }
 0x2a0   : > { %v1589_v55 = vadd.f32 %v1588_v6, %v3920_v54  ;;  %v4156_v28 = vadd.f32 %v3930_v34, %v1791_v22  ;;  %v1838_v57 = vmax.f32 %v4035_v11, %v4054_v23  ;;  %v2011_v0 = vmul.f32 %v2833_v51, %v2010_v44 }
 0x2a1   : > { %v2005_v21 = vsel %vm2004_vm4, %v2002_v42, %v1999_v17  ;;  %v1920_v61 = vsub.f32 0.0, %v1904_v37  ;;  %v1727_v60 = vsub.f32 %v3923_v19, %v1710_v46  ;;  %vm2013_vm6 = vcmp.lt.f32.partialorder %v2012_v35, 0.0004427343 }
 0x2a2   : > { %v2109_v24 = vadd.f32 %v2005_v21, %v1837_v10  ;;  %v1662_v8 = vsub.f32 %v4063_v20, %v1589_v55  ;;  %v1762_v51 = vmul.f32 %v4088_v40, %v4088_v40  ;;  %v1763_v25 = vmul.f32 %v4116_v31, %v4116_v31 }
 0x2a3   : > { %v1943_v1 = vmul.f32 1.442695, %v1920_v61  ;;  %v4163_v14 = vadd.f32 %v3932_v62, %v1727_v60  ;;  %v4176_v49 = vmul.f32 %v1748_v38, %v1748_v38  ;;  %v1886_v7 = vadd.f32 %v4054_v23, %v4035_v11 }
 0x2a4   : > { %v2837_v2 = vpop.eup %2836  ;;  %v2125_v47 = vsel %vm1869_vm5, %v1885_v27, %v2109_v24  ;;  %v1679_v15 = vmul.f32 %v3910_v32, %v1662_v8  ;;  %v4185_v10 = vadd.f32 %v3930_v34, %v1792_v5  ;;  %v1777_v50 = vmul.f32 0.5, %v1761_v9 }
 0x2a5   : > { %v2839_v20 = vpop.eup %2838  ;;  %v2144_v58 = vsel %vm504_vm1, %v2125_v47, 0.0  ;;  %v2008_v26 = vmul.f32 0.6931472, %v2837_v2  ;;  %2840 = vpow2.f32 %v1943_v1  ;;  %v4174_v33 = vsub.f32 %v4156_v28, %v4163_v14 }
 0x2a6   : > { %v1591_v13 = vpop.f32.mrf.mxu0  ;;  %v2145_v59 = vadd.f32 %v2144_v58, %v2143_v48  ;;  %v2015_v18 = vadd.f32 1.0, %v2839_v20  ;;  %v2018_v16 = vmul.f32 -0.5, %v2839_v20  ;;  %v1695_v22 = vmul.f32 %v1679_v15, %v1679_v15 }
 0x2a7   : > { %v1592_v53 = vadd.f32 %v1591_v13, %v3920_v54  ;;  %v2014_v6 = vsel %vm2013_vm6, %v2011_v0, %v2008_v26  ;;  %v1905_v40 = vand.u32 2147483647, %v4174_v33  ;;  %v2021_v63 = vand.u32 2147483647, %v2839_v20 }
 0x2a8   : > { %v2110_v48 = vadd.f32 %v2014_v6, %v1838_v57  ;;  %2842 = vlog2.f32 %v2015_v18  ;;  %v2019_v38 = vadd.f32 1.0, %v2018_v16  ;;  %v1711_v23 = vmul.f32 0.5, %v1695_v22 }
 0x2a9   : > { %v1663_v31 = vsub.f32 %v4079_v45, %v1592_v53  ;;  %v1921_v11 = vsub.f32 0.0, %v1905_v40  ;;  %v1793_v35 = vsub.f32 %v3923_v19, %v1777_v50  ;;  %v1778_v60 = vmul.f32 0.5, %v1762_v51 }
 0x2aa   : > { %v2126_v17 = vsel %vm1870_vm2, %v1886_v7, %v2110_v48  ;;  %v1728_v5 = vsub.f32 %v3923_v19, %v1711_v23  ;;  %v2020_v8 = vmul.f32 %v2839_v20, %v2019_v38  ;;  %v1839_v47 = vmax.f32 %v4044_v39, %v4098_v52 }
 0x2ab   : > { %v2841_v42 = vpop.eup %2840  ;;  %v2146_v37 = vsel %vm504_vm1, %v2126_v17, 0.0  ;;  %v1680_v44 = vmul.f32 %v3910_v32, %v1663_v31  ;;  %v1945_v45 = vmul.f32 1.442695, %v1921_v11  ;;  %vm2022_vm7 = vcmp.lt.f32.partialorder %v2021_v63, 0.0004427343 }
 0x2ac   : > { %v4189_v46 = vadd.f32 %v2146_v37, %v2145_v59  ;;  %v2024_v55 = vadd.f32 1.0, %v2841_v42  ;;  %v2027_v27 = vmul.f32 -0.5, %v2841_v42  ;;  %v4195_v1 = vadd.f32 %v3932_v62, %v1728_v5 }
 0x2ad   : > { %v1696_v61 = vmul.f32 %v1680_v44, %v1680_v44  ;;  %v1765_v13 = vmul.f32 %v4135_v29, %v4135_v29  ;;  %v1887_v20 = vadd.f32 %v4098_v52, %v4044_v39  ;;  %v2030_v59 = vand.u32 2147483647, %v2841_v42 }
 0x2ae   : > { %v1594_v21 = vpop.f32.mrf.mxu0  ;;  %v2843_v24 = vpop.eup %2842  ;;  %2844 = vlog2.f32 %v2024_v55  ;;  %v2028_v0 = vadd.f32 1.0, %v2027_v27  ;;  %v4206_v26 = vsub.f32 %v4185_v10, %v4195_v1  ;;  %v4211_v51 = vadd.f32 %v3930_v34, %v1793_v35 }
 0x2af   : > { %v1595_v9 = vadd.f32 %v1594_v21, %v3920_v54  ;;  %v2017_v57 = vmul.f32 0.6931472, %v2843_v24  ;;  %2846 = vpow2.f32 %v1945_v45  ;;  %v1712_v2 = vmul.f32 0.5, %v1696_v61 }
 0x2b0   : > { %vm1871_vm8 = vcmp.ne.f32.partialorder %v4109_v12, %v4109_v12  ;;  %v1906_v39 = vand.u32 2147483647, %v4206_v26  ;;  %v1794_v29 = vsub.f32 %v3923_v19, %v1778_v60  ;;  %v2029_v7 = vmul.f32 %v2841_v42, %v2028_v0 }
 0x2b1   : > { %v1664_v15 = vsub.f32 %v4084_v30, %v1595_v9  ;;  %v2023_v58 = vsel %vm2022_vm7, %v2020_v8, %v2017_v57  ;;  %v1729_v18 = vsub.f32 %v3923_v19, %v1712_v2  ;;  %v4213_v30 = vmul.f32 0.5, %v1763_v25 }
 0x2b2   : > { %v2111_v53 = vadd.f32 %v2023_v58, %v1839_v47  ;;  %v1922_v50 = vsub.f32 0.0, %v1906_v39  ;;  %v1840_v12 = vmax.f32 %v4119_v43, %v4138_v56  ;;  %vm2031_vm9 = vcmp.lt.f32.partialorder %v2030_v59, 0.0004427343  ;;  %v4255_v39 = vld [vmem:[%s3022_s27 + $0x78] sm:$0xff]  ;;  %s473_s27 = scalar_select %p472_p4, %s2975_s22, 3 }
 0x2b3   : > { %v1681_v16 = vmul.f32 %v3910_v32, %v1664_v15  ;;  %v4220_v48 = vadd.f32 %v3932_v62, %v1729_v18  ;;  %vm1872_vm10 = vcmp.ne.f32.partialorder %v4143_v36, %v4143_v36  ;;  %v1888_v63 = vadd.f32 %v4138_v56, %v4119_v43 }
 0x2b4   : > { %v2845_v52 = vpop.eup %2844  ;;  %v2127_v6 = vsel %vm1871_vm8, %v1887_v20, %v2111_v53  ;;  %v1947_v42 = vmul.f32 1.442695, %v1922_v50  ;;  %v4237_v5 = vadd.f32 %v3930_v34, %v1794_v29  ;;  %v1780_v20 = vmul.f32 0.5, %v4176_v49  ;;  %s2560_s16 = sshll.u32 %s473_s27, 3 }
 0x2b5   : > { %v2847_v22 = vpop.eup %2846  ;;  %v2026_v31 = vmul.f32 0.6931472, %v2845_v52  ;;  %v1697_v17 = vmul.f32 %v1681_v16, %v1681_v16  ;;  %v2148_v11 = vsel %vm504_vm1, %v2127_v6, 0.0  ;;  %v4228_v44 = vsub.f32 %v4211_v51, %v4220_v48  ;;  %s475_s15 = scalar_lea.vmem %s4411_s12, %s2560_s16 }
 0x2b6   : > { %v1597_v40 = vpop.f32.mrf.mxu0  ;;  %v2033_v38 = vadd.f32 1.0, %v2847_v22  ;;  %v2036_v37 = vmul.f32 -0.5, %v2847_v22  ;;  %v2149_v24 = vadd.f32 %v2148_v11, %v4189_v46  ;;  %v2039_v60 = vand.u32 2147483647, %v2847_v22 }
 0x2b7   : > { %v1598_v25 = vadd.f32 %v1597_v40, %v3920_v54  ;;  %v2032_v23 = vsel %vm2031_vm9, %v2029_v7, %v2026_v31  ;;  %v1907_v27 = vand.u32 2147483647, %v4228_v44  ;;  %v1713_v21 = vmul.f32 0.5, %v1697_v17 }
 0x2b8   : > { %v2112_v55 = vadd.f32 %v2032_v23, %v1840_v12  ;;  %2848 = vlog2.f32 %v2033_v38  ;;  %v2037_v9 = vadd.f32 1.0, %v2036_v37  ;;  %v1795_v46 = vsub.f32 %v3923_v19, %v4213_v30 }
 0x2b9   : > { %2850 = vpow2.f32 %v1947_v42  ;;  %v1665_v45 = vsub.f32 %v4112_v3, %v1598_v25  ;;  %v1923_v35 = vsub.f32 0.0, %v1907_v27  ;;  %v1730_v36 = vsub.f32 %v3923_v19, %v1713_v21 }
 0x2ba   : > { %v2128_v61 = vsel %vm1872_vm10, %v1888_v63, %v2112_v55  ;;  %v1781_v58 = vmul.f32 0.5, %v1765_v13  ;;  %v2038_v18 = vmul.f32 %v2847_v22, %v2037_v9  ;;  %v1750_v52 = vmul.f32 %v4255_v39, %v3910_v32 }
 0x2bb   : > { %v1682_v43 = vmul.f32 %v3910_v32, %v1665_v45  ;;  %v2150_v56 = vsel %vm504_vm1, %v2128_v61, 0.0  ;;  %v1949_v2 = vmul.f32 1.442695, %v1923_v35  ;;  %v4244_v3 = vadd.f32 %v3932_v62, %v1730_v36 }
 0x2bc   : > { %v2151_v57 = vadd.f32 %v2150_v56, %v2149_v24  ;;  %v1841_v29 = vmax.f32 %v4156_v28, %v4163_v14  ;;  %vm2040_vm11 = vcmp.lt.f32.partialorder %v2039_v60, 0.0004427343  ;;  %v1889_v40 = vadd.f32 %v4163_v14, %v4156_v28 }
 0x2bd   : > { %v1698_v47 = vmul.f32 %v1682_v43, %v1682_v43  ;;  %2852 = vpow2.f32 %v1949_v2  ;;  %v4252_v16 = vsub.f32 %v4237_v5, %v4244_v3  ;;  %vm1873_vm12 = vcmp.ne.f32.partialorder %v4174_v33, %v4174_v33 }
 0x2be   : > { %v1600_v8 = vpop.f32.mrf.mxu0  ;;  %v2849_v15 = vpop.eup %2848  ;;  %v4270_v12 = vadd.f32 %v3930_v34, %v1795_v46  ;;  %v1796_v38 = vsub.f32 %v3923_v19, %v1780_v20  ;;  %v1797_v63 = vsub.f32 %v3923_v19, %v1781_v58  ;;  %vm1874_vm15 = vcmp.ne.f32.partialorder %v4206_v26, %v4206_v26 }
 0x2bf   : > { %v1601_v0 = vadd.f32 %v1600_v8, %v3920_v54  ;;  %v2851_v53 = vpop.eup %2850  ;;  %v2035_v59 = vmul.f32 0.6931472, %v2849_v15  ;;  %v1908_v13 = vand.u32 2147483647, %v4252_v16  ;;  %v1714_v6 = vmul.f32 0.5, %v1698_v47 }
 0x2c0   : > { %v2042_v30 = vadd.f32 1.0, %v2851_v53  ;;  %v2045_v31 = vmul.f32 -0.5, %v2851_v53  ;;  %v2048_v36 = vand.u32 2147483647, %v2851_v53  ;;  %v4287_v56 = vadd.f32 %v3930_v34, %v1796_v38 }
 0x2c1   : > { %v2041_v49 = vsel %vm2040_vm11, %v2038_v18, %v2035_v59  ;;  %v1666_v7 = vsub.f32 %v4125_v41, %v1601_v0  ;;  %v1924_v50 = vsub.f32 0.0, %v1908_v13  ;;  %v1731_v17 = vsub.f32 %v3923_v19, %v1714_v6 }
 0x2c2   : > { %v2113_v22 = vadd.f32 %v2041_v49, %v1841_v29  ;;  %2854 = vlog2.f32 %v2042_v30  ;;  %v1766_v41 = vmul.f32 %v1750_v52, %v1750_v52  ;;  %v2046_v55 = vadd.f32 1.0, %v2045_v31 }
 0x2c3   : > { %v1683_v25 = vmul.f32 %v3910_v32, %v1666_v7  ;;  %v2853_v28 = vpop.eup %2852  ;;  %v1951_v14 = vmul.f32 1.442695, %v1924_v50  ;;  %v4274_v23 = vadd.f32 %v3932_v62, %v1731_v17  ;;  %v1842_v52 = vmax.f32 %v4185_v10, %v4195_v1 }
 0x2c4   : > { %v2129_v11 = vsel %vm1873_vm12, %v1889_v40, %v2113_v22  ;;  %v2051_v27 = vadd.f32 1.0, %v2853_v28  ;;  %v2054_v21 = vmul.f32 -0.5, %v2853_v28  ;;  %v4280_v35 = vmul.f32 0.5, %v1766_v41 }
 0x2c5   : > { %v1699_v42 = vmul.f32 %v1683_v25, %v1683_v25  ;;  %2856 = vpow2.f32 %v1951_v14  ;;  %v2152_v9 = vsel %vm504_vm1, %v2129_v11, 0.0  ;;  %v4284_v43 = vsub.f32 %v4270_v12, %v4274_v23 }
 0x2c6   : > { %v1603_v37 = vpop.f32.mrf.mxu0  ;;  %2858 = vlog2.f32 %v2051_v27  ;;  %v2057_v47 = vand.u32 2147483647, %v2853_v28  ;;  %v2153_v15 = vadd.f32 %v2152_v9, %v2151_v57  ;;  %v2047_v46 = vmul.f32 %v2851_v53, %v2046_v55 }
 0x2c7   : > { %v1604_v33 = vadd.f32 %v1603_v37, %v3920_v54  ;;  %v1715_v45 = vmul.f32 0.5, %v1699_v42  ;;  %v1909_v0 = vand.u32 2147483647, %v4284_v43  ;;  %v2055_v20 = vadd.f32 1.0, %v2054_v21 }
 0x2c8   : > { %v2855_v24 = vpop.eup %2854  ;;  %v1798_v18 = vsub.f32 %v3923_v19, %v4280_v35  ;;  %vm4302_vm13 = vcmp.lt.f32.partialorder %v2048_v36, 0.0004427343  ;;  %v1843_v22 = vmax.f32 %v4211_v51, %v4220_v48  ;;  %vm4315_vm14 = vcmp.lt.f32.partialorder %v2057_v47, 0.0004427343 }
 0x2c9   : > { %v1667_v61 = vsub.f32 %v4131_v4, %v1604_v33  ;;  %v2044_v60 = vmul.f32 0.6931472, %v2855_v24  ;;  %v1732_v8 = vsub.f32 %v3923_v19, %v1715_v45  ;;  %v4292_v4 = vadd.f32 %v3930_v34, %v1797_v63 }
 0x2ca   : > { %v1925_v49 = vsub.f32 0.0, %v1909_v0  ;;  %v2056_v38 = vmul.f32 %v2853_v28, %v2055_v20  ;;  %v1890_v28 = vadd.f32 %v4195_v1, %v4185_v10  ;;  %vm1875_vm0 = vcmp.ne.f32.partialorder %v4228_v44, %v4228_v44 }
 0x2cb   : > { %v1684_v2 = vmul.f32 %v3910_v32, %v1667_v61  ;;  %v4296_v58 = vadd.f32 %v3932_v62, %v1732_v8  ;;  %v2857_v13 = vpop.eup %2856  ;;  %v2050_v57 = vsel %vm4302_vm13, %v2047_v46, %v2044_v60  ;;  %v4344_v8 = vadd.f32 %v3930_v34, %v1798_v18 }
 0x2cc   : > { %v2859_v40 = vpop.eup %2858  ;;  %v1953_v50 = vmul.f32 1.442695, %v1925_v49  ;;  %v2060_v17 = vadd.f32 1.0, %v2857_v13  ;;  %v2114_v37 = vadd.f32 %v2050_v57, %v1842_v52  ;;  %v2063_v14 = vmul.f32 -0.5, %v2857_v13 }
 0x2cd   : > { %v1700_v59 = vmul.f32 %v1684_v2, %v1684_v2  ;;  %v4311_v7 = vsub.f32 %v4287_v56, %v4296_v58  ;;  %v2053_v25 = vmul.f32 0.6931472, %v2859_v40  ;;  %v1892_v18 = vadd.f32 %v4244_v3, %v4237_v5 }
 0x2ce   : > { %v1606_v30 = vpop.f32.mrf.mxu0  ;;  %2860 = vpow2.f32 %v1953_v50  ;;  %v2064_v61 = vadd.f32 1.0, %v2063_v14  ;;  %v2130_v9 = vsel %vm1874_vm15, %v1890_v28, %v2114_v37  ;;  %vm1876_vm4 = vcmp.ne.f32.partialorder %v4252_v16, %v4252_v16 }
 0x2cf   : > { %v1716_v53 = vmul.f32 0.5, %v1700_v59  ;;  %v1607_v6 = vadd.f32 %v1606_v30, %v3920_v54  ;;  %v1910_v11 = vand.u32 2147483647, %v4311_v7  ;;  %v2059_v42 = vsel %vm4315_vm14, %v2056_v38, %v2053_v25 }
 0x2d0   : > { %2862 = vlog2.f32 %v2060_v17  ;;  %v2115_v55 = vadd.f32 %v2059_v42, %v1843_v22  ;;  %v2154_v24 = vsel %vm504_vm1, %v2130_v9, 0.0  ;;  %v2065_v46 = vmul.f32 %v2857_v13, %v2064_v61 }
 0x2d1   : > { %v1733_v41 = vsub.f32 %v3923_v19, %v1716_v53  ;;  %v1668_v54 = vsub.f32 %v4255_v39, %v1607_v6  ;;  %v1891_v39 = vadd.f32 %v4220_v48, %v4211_v51  ;;  %v1926_v27 = vsub.f32 0.0, %v1910_v11 }
 0x2d2   : > { %v2066_v48 = vand.u32 2147483647, %v2857_v13  ;;  %v2155_v26 = vadd.f32 %v2154_v24, %v2153_v15  ;;  %v1844_v15 = vmax.f32 %v4237_v5, %v4244_v3  ;;  %v1845_v3 = vmax.f32 %v4270_v12, %v4274_v23 }
 0x2d3   : > { %v4325_v33 = vadd.f32 %v3932_v62, %v1733_v41  ;;  %v1685_v63 = vmul.f32 %v3910_v32, %v1668_v54  ;;  %v1955_v32 = vmul.f32 1.442695, %v1926_v27  ;;  %v2131_v10 = vsel %vm1875_vm0, %v1891_v39, %v2115_v55 }
 0x2d4   : > { %v2861_v35 = vpop.eup %2860  ;;  %v2156_v36 = vsel %vm504_vm1, %v2131_v10, 0.0  ;;  %vm2067_vm3 = vcmp.lt.f32.partialorder %v2066_v48, 0.0004427343  ;;  %v1893_v16 = vadd.f32 %v4274_v23, %v4270_v12  ;;  %vm1877_vm6 = vcmp.ne.f32.partialorder %v4284_v43, %v4284_v43 }
 0x2d5   : > { %v1701_v21 = vmul.f32 %v1685_v63, %v1685_v63  ;;  %v4336_v45 = vsub.f32 %v4292_v4, %v4325_v33  ;;  %2864 = vpow2.f32 %v1955_v32  ;;  %v2069_v47 = vadd.f32 1.0, %v2861_v35 }
 0x2d6   : > { %v2863_v60 = vpop.eup %2862  ;;  %v2072_v20 = vmul.f32 -0.5, %v2861_v35  ;;  %v2157_v59 = vadd.f32 %v2156_v36, %v2155_v26  ;;  %v2075_v57 = vand.u32 2147483647, %v2861_v35  ;;  %v1846_v12 = vmax.f32 %v4287_v56, %v4296_v58 }
 0x2d7   : > { %v1717_v1 = vmul.f32 0.5, %v1701_v21  ;;  %v1911_v51 = vand.u32 2147483647, %v4336_v45  ;;  %v2062_v0 = vmul.f32 0.6931472, %v2863_v60  ;;  %2866 = vlog2.f32 %v2069_v47 }
 0x2d8   : > { %v2073_v49 = vadd.f32 1.0, %v2072_v20  ;;  %vm2076_vm5 = vcmp.lt.f32.partialorder %v2075_v57, 0.0004427343  ;;  %vm1878_vm7 = vcmp.ne.f32.partialorder %v4311_v7, %v4311_v7  ;;  %v1847_v60 = vmax.f32 %v4292_v4, %v4325_v33  ;;  %v2365_v57 = vpop.xlane.xlu1 %2364 }
 0x2d9   : > { %v1734_v44 = vsub.f32 %v3923_v19, %v1717_v1  ;;  %v1927_v2 = vsub.f32 0.0, %v1911_v51  ;;  %v2068_v30 = vsel %vm2067_vm3, %v2065_v46, %v2062_v0  ;;  %v1894_v1 = vadd.f32 %v4296_v58, %v4287_v56 }
 0x2da   : > { %v2116_v13 = vadd.f32 %v2068_v30, %v1844_v15  ;;  %v2074_v25 = vmul.f32 %v2861_v35, %v2073_v49  ;;  %v1895_v56 = vadd.f32 %v4325_v33, %v4292_v4  ;;  %vm1879_vm9 = vcmp.ne.f32.partialorder %v4336_v45, %v4336_v45 }
 0x2db   : > { %v4348_v52 = vadd.f32 %v3932_v62, %v1734_v44  ;;  %v1957_v29 = vmul.f32 1.442695, %v1927_v2  ;;  %v2865_v19 = vpop.eup %2864 }
 0x2dc   : > { %v2078_v53 = vadd.f32 1.0, %v2865_v19  ;;  %v2081_v6 = vmul.f32 -0.5, %v2865_v19  ;;  %v2132_v40 = vsel %vm1876_vm4, %v1892_v18, %v2116_v13  ;;  %v2084_v14 = vand.u32 2147483647, %v2865_v19 }
 0x2dd   : > { %v4354_v34 = vsub.f32 %v4344_v8, %v4348_v52  ;;  %2868 = vpow2.f32 %v1957_v29  ;;  %v2867_v22 = vpop.eup %2866  ;;  %v2158_v50 = vsel %vm504_vm1, %v2132_v40, 0.0  ;;  %v1896_v4 = vadd.f32 %v4348_v52, %v4344_v8 }
 0x2de   : > { %2870 = vlog2.f32 %v2078_v53  ;;  %v2071_v17 = vmul.f32 0.6931472, %v2867_v22  ;;  %v2159_v38 = vadd.f32 %v2158_v50, %v2157_v59  ;;  %v2082_v37 = vadd.f32 1.0, %v2081_v6 }
 0x2df   : > { %v1912_v62 = vand.u32 2147483647, %v4354_v34  ;;  %vm2085_vm2 = vcmp.lt.f32.partialorder %v2084_v14, 0.0004427343  ;;  %vm1880_vm11 = vcmp.ne.f32.partialorder %v4354_v34, %v4354_v34  ;;  %v2366_v6 = vrot.slane %v2365_v57, 4 }
 0x2e0   : > { %v2077_v54 = vsel %vm2076_vm5, %v2074_v25, %v2071_v17  ;;  %v2083_v27 = vmul.f32 %v2865_v19, %v2082_v37  ;;  %v1848_v19 = vmax.f32 %v4344_v8, %v4348_v52 }
 0x2e1   : > { %v1928_v31 = vsub.f32 0.0, %v1912_v62  ;;  %v2117_v63 = vadd.f32 %v2077_v54, %v1845_v3  ;;  %v2337_v62 = vpop.xlane.xlu0 %2336  ;;  %v2367_v22 = vadd.f32 %v2366_v6, %v2365_v57 }
 0x2e2   : > { %v2338_v53 = vrot.slane %v2337_v62, 4 }
 0x2e3   : > { %v2869_v5 = vpop.eup %2868  ;;  %v1959_v41 = vmul.f32 1.442695, %v1928_v31  ;;  %v2133_v39 = vsel %vm1877_vm6, %v1893_v16, %v2117_v63  ;;  %v2368_v17 = vrot.slane %v2367_v22, 2 }
 0x2e4   : > { %v2087_v11 = vadd.f32 1.0, %v2869_v5  ;;  %v2090_v42 = vmul.f32 -0.5, %v2869_v5  ;;  %v2871_v28 = vpop.eup %2870  ;;  %v2160_v21 = vsel %vm504_vm1, %v2133_v39, 0.0  ;;  %v2093_v9 = vand.u32 2147483647, %v2869_v5 }
 0x2e5   : > { %2872 = vpow2.f32 %v1959_v41  ;;  %v2080_v55 = vmul.f32 0.6931472, %v2871_v28  ;;  %v2161_v32 = vadd.f32 %v2160_v21, %v2159_v38  ;;  %v2339_v40 = vadd.f32 %v2338_v53, %v2337_v62 }
 0x2e6   : > { %2874 = vlog2.f32 %v2087_v11  ;;  %v2091_v23 = vadd.f32 1.0, %v2090_v42  ;;  %vm2094_vm8 = vcmp.lt.f32.partialorder %v2093_v9, 0.0004427343  ;;  %v2369_v34 = vadd.f32 %v2368_v17, %v2367_v22 }
 0x2e7   : > { %v2086_v61 = vsel %vm2085_vm2, %v2083_v27, %v2080_v55  ;;  %v2340_v31 = vrot.slane %v2339_v40, 2 }
 0x2e8   : > { %v2118_v43 = vadd.f32 %v2086_v61, %v1846_v12  ;;  %v2092_v35 = vmul.f32 %v2869_v5, %v2091_v23  ;;  %v2370_v16 = vrot.slane %v2369_v34, 1 }
 0x2e9   : > { %v2341_v25 = vadd.f32 %v2340_v31, %v2339_v40 }
 0x2ea   : > { %v2134_v36 = vsel %vm1878_vm7, %v1894_v1, %v2118_v43  ;;  %v2371_v11 = vadd.f32 %v2370_v16, %v2369_v34 }
 0x2eb   : > { %v2873_v10 = vpop.eup %2872  ;;  %v2162_v44 = vsel %vm504_vm1, %v2134_v36, 0.0  ;;  %v2342_v3 = vrot.slane %v2341_v25, 1 }
 0x2ec   : > { %v2875_v51 = vpop.eup %2874  ;;  %v2096_v48 = vadd.f32 1.0, %v2873_v10  ;;  %v2099_v26 = vmul.f32 -0.5, %v2873_v10  ;;  %v2163_v47 = vadd.f32 %v2162_v44, %v2161_v32  ;;  %v2102_v0 = vand.u32 2147483647, %v2873_v10 }
 0x2ed   : > { %v2089_v24 = vmul.f32 0.6931472, %v2875_v51  ;;  %v2343_v37 = vadd.f32 %v2342_v3, %v2341_v25 }
 0x2ee   : > { %2876 = vlog2.f32 %v2096_v48  ;;  %v2100_v7 = vadd.f32 1.0, %v2099_v26  ;;  %vm2103_vm10 = vcmp.lt.f32.partialorder %v2102_v0, 0.0004427343 }
 0x2ef   : > { %v2095_v2 = vsel %vm2094_vm8, %v2092_v35, %v2089_v24 }
 0x2f0   : > { %v2119_v58 = vadd.f32 %v2095_v2, %v1847_v60  ;;  %v2101_v30 = vmul.f32 %v2873_v10, %v2100_v7 }
 0x2f2   : > { %v2135_v46 = vsel %vm1879_vm9, %v1895_v56, %v2119_v58 }
 0x2f3   : > { %v2164_v20 = vsel %vm504_vm1, %v2135_v46, 0.0 }
 0x2f4   : > { %v2877_v59 = vpop.eup %2876  ;;  %v2165_v29 = vadd.f32 %v2164_v20, %v2163_v47 }
 0x2f5   : > { %v2098_v15 = vmul.f32 0.6931472, %v2877_v59 }
 0x2f7   : > { %v2104_v18 = vsel %vm2103_vm10, %v2101_v30, %v2098_v15 }
 0x2f8   : > { %v2120_v33 = vadd.f32 %v2104_v18, %v1848_v19 }
 0x2fa   : > { %v2136_v45 = vsel %vm1880_vm11, %v1896_v4, %v2120_v33 }
 0x2fb   : > { %v2166_v49 = vsel %vm504_vm1, %v2136_v45, 0.0 }
 0x2fc   : > { %v2167_v13 = vadd.f32 %v2166_v49, %v2165_v29 }
 0x2fe   : > { %2168 = vadd.xlane.f32.xlu2 %v2167_v13 }
 0x371   : > { %v2169_v50 = vpop.xlane.xlu2 %2168 }
 0x372   : > { %v2170_v8 = vrot.slane %v2169_v50, 4 }
 0x374   : > { %v2171_v52 = vadd.f32 %v2170_v8, %v2169_v50 }
 0x376   : > { %v2172_v38 = vrot.slane %v2171_v52, 2 }
 0x378   : > { %v2173_v5 = vadd.f32 %v2172_v38, %v2171_v52 }
 0x37a   : > { %v2174_v41 = vrot.slane %v2173_v5, 1 }
 0x37c   : > { %v2175_v54 = vadd.f32 %v2174_v41, %v2173_v5 }
 0x37e   : > { %2664 = vpush %v2175_v54 }
 0x37f   : > { %2666 = vpush %v2343_v37 }
 0x380   : > { %2668 = vpush %v2371_v11 }
 0x3af   : > { %s2665_s28 = spop %2664 }
 0x3b0   : > { %s2667_s29 = spop %2666  ;;  %s2346_s13 = smul.f32 -2.0, %s2665_s28 }
 0x3b1   : > { %s2345_s30 = smul.f32 -0.5, %s2667_s29  ;;  %s2669_s24 = spop %2668 }
 0x3b2   : > { %s4449_s24 = smov (!%p2373_p5, %s2669_s24), 0.0 }
 0x3b3   : > { %s2347_s14 = smul.f32 2.0, %s2345_s30 }
 0x3b5   : > { %s2348_s17 = sadd.f32 %s2347_s14, %s2346_s13 }
 0x3b7   : > { %s2375_s20 = sadd.f32 %s4449_s24, %s2348_s17 }
 0x3b9   : > { %v2376_v14 = vstv %s2375_s20 }
 0x3ba   : > { %2377 = vst [vmem:[%s475_s15] sm:$0xff] %v2376_v14 }
 0x3bb PF: > { %s23_s21 = sadd.s32 1, %s2902_s21  }
 0x3bc   : > { %p20_p6 = scmp.ge.s32.totalorder %s23_s21, 6  }
 0x3be   :  { %22 = sbr.rel (!%p20_p6) target bundleno = 1 (0x1), region = 125 }

</bundles_post_ra>
